<compile_context>
chip_gen: v7x
topology: tpu7x:2x2x1
jax: 0.10.0
libtpu: 0.0.40
codegen_flags: <defaults>
</compile_context>

<pallas_src>
import functools

import jax
import jax.numpy as jnp
from jax import lax
from jax.experimental import pallas as pl
from jax.experimental.pallas import tpu as pltpu

LN_EPS = 1e-5


# ----------------------------------------------------------------------------
# Fused kernel: mean -> LayerNorm -> attn -> diag mask -> argmax -> gather
# ----------------------------------------------------------------------------
def _match_fused_kernel(gamma_ref, beta_ref, x_ref, src_ref, o_ref, *, scale):
    # x_ref:   (n, c, hw)  current batch slab (stats / attention)
    # src_ref: (n, c*hw)   batch-0 slab  (gather source = x.flatten(0,1)[0:n])
    # o_ref:   (n, c*hw)   lane-dense output block
    n = x_ref.shape[0]
    x = x_ref[...]

    # avg_fea = x.mean(dim=(-2, -1))  (spatial flattened to hw on the lane dim)
    avg = jnp.mean(x, axis=-1)                                # (n, c)

    # LayerNorm over channel dim (biased variance, eps=1e-5, affine)
    mu = jnp.mean(avg, axis=-1, keepdims=True)                # (n, 1)
    var = jnp.mean((avg - mu) ** 2, axis=-1, keepdims=True)   # (n, 1)
    q = (avg - mu) * lax.rsqrt(var + LN_EPS)
    q = q * gamma_ref[...] + beta_ref[...]                    # (n, c)

    # attn = q @ q^T * scale   (contract channel dims; f32 accumulate)
    attn = lax.dot_general(
        q, q, (((1,), (1,)), ((), ())), preferred_element_type=jnp.float32
    ) * scale                                                 # (n, n)

    # attn = attn - 100 * eye(n)
    row = lax.broadcasted_iota(jnp.int32, (n, n), 0)
    col = lax.broadcasted_iota(jnp.int32, (n, n), 1)
    attn = jnp.where(row == col, attn - 100.0, attn)

    # First-occurrence argmax per row (torch.max semantics)
    m = jnp.max(attn, axis=-1, keepdims=True)                 # (n, 1)
    first = jnp.min(jnp.where(attn == m, col, n), axis=-1, keepdims=True)  # (n, 1)

    # In-VMEM exact gather: o[r] = src[first[r]].  Unrolled where-select keeps
    # the copy bit-exact; for large n this could become a one-hot MXU matmul.
    chw = o_ref.shape[-1]

    def body(j, acc):
        picked = first == j                                   # (n, 1) bool
        src_row = src_ref[pl.ds(j, 1), :]                     # (1, c*hw)
        return jnp.where(picked, src_row, acc)                # (n, c*hw)

    y = lax.fori_loop(0, n, body, jnp.zeros((n, chw), o_ref.dtype), unroll=True)
    o_ref[...] = y


def match_forward(x, gamma, beta):
    """x: (b, n, c, h, w) f32; gamma, beta: (c,) LayerNorm affine params."""
    b, n, c, h, w = x.shape
    hw = h * w
    chw = c * hw
    scale = float(c) ** (-0.5)

    x_stats = x.reshape(b, n, c, hw)        # spatial on lane dim for the mean
    x_rows = x.reshape(b * n, chw)          # lane-dense rows (torch flatten(0,1))
    gamma2 = gamma.reshape(1, c).astype(x.dtype)
    beta2 = beta.reshape(1, c).astype(x.dtype)

    fused = pl.pallas_call(
        functools.partial(_match_fused_kernel, scale=scale),
        out_shape=jax.ShapeDtypeStruct((b * n, chw), x.dtype),
        grid_spec=pltpu.PrefetchScalarGridSpec(
            num_scalar_prefetch=0,
            grid=(b,),
            in_specs=[
                pl.BlockSpec((1, c), lambda i: (0, 0)),                  # gamma
                pl.BlockSpec((1, c), lambda i: (0, 0)),                  # beta
                pl.BlockSpec((None, n, c, hw), lambda i: (i, 0, 0, 0)),  # x[i]
                pl.BlockSpec((n, chw), lambda i: (0, 0)),                # x rows of batch 0
            ],
            out_specs=pl.BlockSpec((n, chw), lambda i: (i, 0)),          # y rows of batch i
        ),
        compiler_params=pltpu.CompilerParams(
            dimension_semantics=("parallel",),   # shard batch across TCs on v7x
        ),
    )
    y_rows = fused(gamma2, beta2, x_stats, x_rows)            # (b*n, c*hw)
    return y_rows.reshape(b, n, c, h, w)


# ----------------------------------------------------------------------------
# Pure-JAX reference (mirrors the PyTorch eval path) for correctness checking
# ----------------------------------------------------------------------------
def match_reference(x, gamma, beta):
    b, n, c, h, w = x.shape
    scale = float(c) ** (-0.5)
    avg = x.mean(axis=(-2, -1))                               # (b, n, c)
    mu = avg.mean(axis=-1, keepdims=True)
    var = ((avg - mu) ** 2).mean(axis=-1, keepdims=True)
    q = (avg - mu) / jnp.sqrt(var + LN_EPS) * gamma + beta
    attn = jnp.einsum("bnc,bmc->bnm", q, q) * scale
    attn = attn - 100.0 * jnp.eye(n, dtype=attn.dtype)[None]
    indices = jnp.argmax(attn, axis=-1).reshape(b * n)        # values in [0, n)
    v = x.reshape(b * n, c, h, w)
    return v[indices].reshape(b, n, c, h, w)


if __name__ == "__main__":
    key = jax.random.PRNGKey(0)
    k1, k2, k3 = jax.random.split(key, 3)

    b, n, c, h, w = 2, 8, 32, 8, 8          # dim = c = 32
    x = jax.random.normal(k1, (b, n, c, h, w), dtype=jnp.float32)
    # Deterministic (non-trivial) LayerNorm affine parameters.
    gamma = 1.0 + 0.1 * jax.random.normal(k2, (c,), dtype=jnp.float32)
    beta = 0.1 * jax.random.normal(k3, (c,), dtype=jnp.float32)

    y = match_forward(x, gamma, beta)
    jax.block_until_ready(y)

    y_ref = match_reference(x, gamma, beta)
    assert y.shape == (b, n, c, h, w)
    assert jnp.allclose(y, y_ref, atol=1e-5, rtol=1e-5), "mismatch vs reference"

    print("KERNEL_OK")
</pallas_src>

<mosaic_0001>
module attributes {stable_mosaic.version = 11 : i64} {
  func.func @_match_fused_kernel(%arg0: i32, %arg1: memref<1x32xf32, #tpu.memory_space<vmem>>, %arg2: memref<1x32xf32, #tpu.memory_space<vmem>>, %arg3: memref<1x8x32x64xf32, #tpu.memory_space<vmem>>, %arg4: memref<8x2048xf32, #tpu.memory_space<vmem>>, %arg5: memref<8x2048xf32, #tpu.memory_space<vmem>>) attributes {dimension_semantics = [#tpu.dimension_semantics<parallel>], iteration_bounds = array<i64: 2>, scalar_prefetch = 0 : i64, scratch_operands = 0 : i64, tpu.core_type = #tpu.core_type<tc>, window_params = [{pipeline_mode = #tpu.pipeline_mode<synchronous>, transform_indices = @transform_0, window_bounds = array<i64: 1, 32>}, {pipeline_mode = #tpu.pipeline_mode<synchronous>, transform_indices = @transform_1, window_bounds = array<i64: 1, 32>}, {transform_indices = @transform_2, window_bounds = array<i64: 1, 8, 32, 64>}, {transform_indices = @transform_3, window_bounds = array<i64: 8, 2048>}, {transform_indices = @transform_4, window_bounds = array<i64: 8, 2048>}]} {
    %c0 = arith.constant 0 : index
    %c0_0 = arith.constant 0 : index
    %c0_1 = arith.constant 0 : index
    %c0_2 = arith.constant 0 : index
    %0 = vector.load %arg3[%c0, %c0_0, %c0_1, %c0_2] : memref<1x8x32x64xf32, #tpu.memory_space<vmem>>, vector<1x8x32x64xf32>
    %1 = vector.shape_cast %0 : vector<1x8x32x64xf32> to vector<8x32x64xf32>
    %cst = arith.constant dense<0.000000e+00> : vector<8x32xf32>
    %2 = vector.multi_reduction <add>, %1, %cst [2] : vector<8x32x64xf32> to vector<8x32xf32>
    %cst_3 = arith.constant 6.400000e+01 : f32
    %3 = vector.broadcast %cst_3 : f32 to vector<8x32xf32>
    %4 = arith.divf %2, %3 : vector<8x32xf32>
    %cst_4 = arith.constant dense<0.000000e+00> : vector<8xf32>
    %5 = vector.multi_reduction <add>, %4, %cst_4 [1] : vector<8x32xf32> to vector<8xf32>
    %6 = vector.shape_cast %5 : vector<8xf32> to vector<8x1xf32>
    %cst_5 = arith.constant 3.200000e+01 : f32
    %7 = vector.broadcast %cst_5 : f32 to vector<8x1xf32>
    %8 = arith.divf %6, %7 : vector<8x1xf32>
    %9 = vector.broadcast %8 : vector<8x1xf32> to vector<8x32xf32>
    %10 = arith.subf %4, %9 : vector<8x32xf32>
    %11 = arith.mulf %10, %10 : vector<8x32xf32>
    %cst_6 = arith.constant dense<0.000000e+00> : vector<8xf32>
    %12 = vector.multi_reduction <add>, %11, %cst_6 [1] : vector<8x32xf32> to vector<8xf32>
    %13 = vector.shape_cast %12 : vector<8xf32> to vector<8x1xf32>
    %cst_7 = arith.constant 3.200000e+01 : f32
    %14 = vector.broadcast %cst_7 : f32 to vector<8x1xf32>
    %15 = arith.divf %13, %14 : vector<8x1xf32>
    %16 = vector.broadcast %8 : vector<8x1xf32> to vector<8x32xf32>
    %17 = arith.subf %4, %16 : vector<8x32xf32>
    %cst_8 = arith.constant 9.99999974E-6 : f32
    %18 = vector.broadcast %cst_8 : f32 to vector<8x1xf32>
    %19 = arith.addf %15, %18 : vector<8x1xf32>
    %20 = math.rsqrt %19 : vector<8x1xf32>
    %21 = vector.broadcast %20 : vector<8x1xf32> to vector<8x32xf32>
    %22 = arith.mulf %17, %21 : vector<8x32xf32>
    %c0_9 = arith.constant 0 : index
    %c0_10 = arith.constant 0 : index
    %23 = vector.load %arg1[%c0_9, %c0_10] : memref<1x32xf32, #tpu.memory_space<vmem>>, vector<1x32xf32>
    %24 = vector.broadcast %23 : vector<1x32xf32> to vector<8x32xf32>
    %25 = arith.mulf %22, %24 : vector<8x32xf32>
    %c0_11 = arith.constant 0 : index
    %c0_12 = arith.constant 0 : index
    %26 = vector.load %arg2[%c0_11, %c0_12] : memref<1x32xf32, #tpu.memory_space<vmem>>, vector<1x32xf32>
    %27 = vector.broadcast %26 : vector<1x32xf32> to vector<8x32xf32>
    %28 = arith.addf %25, %27 : vector<8x32xf32>
    %cst_13 = arith.constant dense<0.000000e+00> : vector<8x8xf32>
    %29 = tpu.matmul %28, %28, %cst_13 {dimension_numbers = #tpu.dot_dimension_numbers<[1], [1], [0], [0], [0, 0, 1, 0], [], []>} : vector<8x32xf32>, vector<8x32xf32>, vector<8x8xf32> -> vector<8x8xf32>
    %cst_14 = arith.constant 0.176776692 : f32
    %30 = vector.broadcast %cst_14 : f32 to vector<8x8xf32>
    %31 = arith.mulf %29, %30 : vector<8x8xf32>
    %32 = tpu.iota {dimensions = array<i32: 0>} : vector<8x8xi32>
    %33 = tpu.iota {dimensions = array<i32: 1>} : vector<8x8xi32>
    %34 = arith.cmpi eq, %32, %33 : vector<8x8xi32>
    %cst_15 = arith.constant 1.000000e+02 : f32
    %35 = vector.broadcast %cst_15 : f32 to vector<8x8xf32>
    %36 = arith.subf %31, %35 : vector<8x8xf32>
    %37 = arith.select %34, %36, %31 : vector<8x8xi1>, vector<8x8xf32>
    %cst_16 = arith.constant dense<0xFF800000> : vector<8xf32>
    %38 = vector.multi_reduction <maximumf>, %37, %cst_16 [1] : vector<8x8xf32> to vector<8xf32>
    %39 = vector.shape_cast %38 : vector<8xf32> to vector<8x1xf32>
    %40 = vector.broadcast %39 : vector<8x1xf32> to vector<8x8xf32>
    %41 = arith.cmpf oeq, %37, %40 : vector<8x8xf32>
    %c8_i32 = arith.constant 8 : i32
    %42 = vector.broadcast %c8_i32 : i32 to vector<8x8xi32>
    %43 = arith.select %41, %33, %42 : vector<8x8xi1>, vector<8x8xi32>
    %cst_17 = arith.constant dense<2147483647> : vector<8xi32>
    %44 = vector.multi_reduction <minsi>, %43, %cst_17 [1] : vector<8x8xi32> to vector<8xi32>
    %45 = vector.shape_cast %44 : vector<8xi32> to vector<8x1xi32>
    %cst_18 = arith.constant 0.000000e+00 : f32
    %46 = vector.broadcast %cst_18 : f32 to vector<8x2048xf32>
    %c0_i32 = arith.constant 0 : i32
    %47 = vector.broadcast %c0_i32 : i32 to vector<8x1xi32>
    %48 = arith.cmpi eq, %45, %47 : vector<8x1xi32>
    %49 = arith.index_cast %c0_i32 : i32 to index
    %c0_19 = arith.constant 0 : index
    %50 = vector.load %arg4[%49, %c0_19] : memref<8x2048xf32, #tpu.memory_space<vmem>>, vector<1x2048xf32>
    %51 = vector.shape_cast %48 : vector<8x1xi1> to vector<8x1xi1>
    %52 = vector.broadcast %51 : vector<8x1xi1> to vector<8x2048xi1>
    %53 = vector.shape_cast %50 : vector<1x2048xf32> to vector<1x2048xf32>
    %54 = vector.broadcast %53 : vector<1x2048xf32> to vector<8x2048xf32>
    %55 = arith.select %52, %54, %46 : vector<8x2048xi1>, vector<8x2048xf32>
    %c1_i32 = arith.constant 1 : i32
    %56 = vector.broadcast %c1_i32 : i32 to vector<8x1xi32>
    %57 = arith.cmpi eq, %45, %56 : vector<8x1xi32>
    %58 = arith.index_cast %c1_i32 : i32 to index
    %c0_20 = arith.constant 0 : index
    %59 = vector.load %arg4[%58, %c0_20] : memref<8x2048xf32, #tpu.memory_space<vmem>>, vector<1x2048xf32>
    %60 = vector.shape_cast %57 : vector<8x1xi1> to vector<8x1xi1>
    %61 = vector.broadcast %60 : vector<8x1xi1> to vector<8x2048xi1>
    %62 = vector.shape_cast %59 : vector<1x2048xf32> to vector<1x2048xf32>
    %63 = vector.broadcast %62 : vector<1x2048xf32> to vector<8x2048xf32>
    %64 = arith.select %61, %63, %55 : vector<8x2048xi1>, vector<8x2048xf32>
    %c2_i32 = arith.constant 2 : i32
    %65 = vector.broadcast %c2_i32 : i32 to vector<8x1xi32>
    %66 = arith.cmpi eq, %45, %65 : vector<8x1xi32>
    %67 = arith.index_cast %c2_i32 : i32 to index
    %c0_21 = arith.constant 0 : index
    %68 = vector.load %arg4[%67, %c0_21] : memref<8x2048xf32, #tpu.memory_space<vmem>>, vector<1x2048xf32>
    %69 = vector.shape_cast %66 : vector<8x1xi1> to vector<8x1xi1>
    %70 = vector.broadcast %69 : vector<8x1xi1> to vector<8x2048xi1>
    %71 = vector.shape_cast %68 : vector<1x2048xf32> to vector<1x2048xf32>
    %72 = vector.broadcast %71 : vector<1x2048xf32> to vector<8x2048xf32>
    %73 = arith.select %70, %72, %64 : vector<8x2048xi1>, vector<8x2048xf32>
    %c3_i32 = arith.constant 3 : i32
    %74 = vector.broadcast %c3_i32 : i32 to vector<8x1xi32>
    %75 = arith.cmpi eq, %45, %74 : vector<8x1xi32>
    %76 = arith.index_cast %c3_i32 : i32 to index
    %c0_22 = arith.constant 0 : index
    %77 = vector.load %arg4[%76, %c0_22] : memref<8x2048xf32, #tpu.memory_space<vmem>>, vector<1x2048xf32>
    %78 = vector.shape_cast %75 : vector<8x1xi1> to vector<8x1xi1>
    %79 = vector.broadcast %78 : vector<8x1xi1> to vector<8x2048xi1>
    %80 = vector.shape_cast %77 : vector<1x2048xf32> to vector<1x2048xf32>
    %81 = vector.broadcast %80 : vector<1x2048xf32> to vector<8x2048xf32>
    %82 = arith.select %79, %81, %73 : vector<8x2048xi1>, vector<8x2048xf32>
    %c4_i32 = arith.constant 4 : i32
    %83 = vector.broadcast %c4_i32 : i32 to vector<8x1xi32>
    %84 = arith.cmpi eq, %45, %83 : vector<8x1xi32>
    %85 = arith.index_cast %c4_i32 : i32 to index
    %c0_23 = arith.constant 0 : index
    %86 = vector.load %arg4[%85, %c0_23] : memref<8x2048xf32, #tpu.memory_space<vmem>>, vector<1x2048xf32>
    %87 = vector.shape_cast %84 : vector<8x1xi1> to vector<8x1xi1>
    %88 = vector.broadcast %87 : vector<8x1xi1> to vector<8x2048xi1>
    %89 = vector.shape_cast %86 : vector<1x2048xf32> to vector<1x2048xf32>
    %90 = vector.broadcast %89 : vector<1x2048xf32> to vector<8x2048xf32>
    %91 = arith.select %88, %90, %82 : vector<8x2048xi1>, vector<8x2048xf32>
    %c5_i32 = arith.constant 5 : i32
    %92 = vector.broadcast %c5_i32 : i32 to vector<8x1xi32>
    %93 = arith.cmpi eq, %45, %92 : vector<8x1xi32>
    %94 = arith.index_cast %c5_i32 : i32 to index
    %c0_24 = arith.constant 0 : index
    %95 = vector.load %arg4[%94, %c0_24] : memref<8x2048xf32, #tpu.memory_space<vmem>>, vector<1x2048xf32>
    %96 = vector.shape_cast %93 : vector<8x1xi1> to vector<8x1xi1>
    %97 = vector.broadcast %96 : vector<8x1xi1> to vector<8x2048xi1>
    %98 = vector.shape_cast %95 : vector<1x2048xf32> to vector<1x2048xf32>
    %99 = vector.broadcast %98 : vector<1x2048xf32> to vector<8x2048xf32>
    %100 = arith.select %97, %99, %91 : vector<8x2048xi1>, vector<8x2048xf32>
    %c6_i32 = arith.constant 6 : i32
    %101 = vector.broadcast %c6_i32 : i32 to vector<8x1xi32>
    %102 = arith.cmpi eq, %45, %101 : vector<8x1xi32>
    %103 = arith.index_cast %c6_i32 : i32 to index
    %c0_25 = arith.constant 0 : index
    %104 = vector.load %arg4[%103, %c0_25] : memref<8x2048xf32, #tpu.memory_space<vmem>>, vector<1x2048xf32>
    %105 = vector.shape_cast %102 : vector<8x1xi1> to vector<8x1xi1>
    %106 = vector.broadcast %105 : vector<8x1xi1> to vector<8x2048xi1>
    %107 = vector.shape_cast %104 : vector<1x2048xf32> to vector<1x2048xf32>
    %108 = vector.broadcast %107 : vector<1x2048xf32> to vector<8x2048xf32>
    %109 = arith.select %106, %108, %100 : vector<8x2048xi1>, vector<8x2048xf32>
    %c7_i32 = arith.constant 7 : i32
    %110 = vector.broadcast %c7_i32 : i32 to vector<8x1xi32>
    %111 = arith.cmpi eq, %45, %110 : vector<8x1xi32>
    %112 = arith.index_cast %c7_i32 : i32 to index
    %c0_26 = arith.constant 0 : index
    %113 = vector.load %arg4[%112, %c0_26] : memref<8x2048xf32, #tpu.memory_space<vmem>>, vector<1x2048xf32>
    %114 = vector.shape_cast %111 : vector<8x1xi1> to vector<8x1xi1>
    %115 = vector.broadcast %114 : vector<8x1xi1> to vector<8x2048xi1>
    %116 = vector.shape_cast %113 : vector<1x2048xf32> to vector<1x2048xf32>
    %117 = vector.broadcast %116 : vector<1x2048xf32> to vector<8x2048xf32>
    %118 = arith.select %115, %117, %109 : vector<8x2048xi1>, vector<8x2048xf32>
    %c8_i32_27 = arith.constant 8 : i32
    %c0_28 = arith.constant 0 : index
    %c0_29 = arith.constant 0 : index
    %119 = vector.load %arg5[%c0_28, %c0_29] : memref<8x2048xf32, #tpu.memory_space<vmem>>, vector<8x2048xf32>
    tpu.vector_store %arg5[%c0_28, %c0_29], %118 {strides = array<i32>} : memref<8x2048xf32, #tpu.memory_space<vmem>>, vector<8x2048xf32>,
    return
  }
  func.func @transform_0(%arg0: i32) -> (i32, i32) {
    %c0_i32 = arith.constant 0 : i32
    %c0_i32_0 = arith.constant 0 : i32
    %c0_i32_1 = arith.constant 0 : i32
    return %c0_i32, %c0_i32_0 : i32, i32
  }
  func.func @transform_1(%arg0: i32) -> (i32, i32) {
    %c0_i32 = arith.constant 0 : i32
    %c0_i32_0 = arith.constant 0 : i32
    %c0_i32_1 = arith.constant 0 : i32
    return %c0_i32, %c0_i32_0 : i32, i32
  }
  func.func @transform_2(%arg0: i32) -> (i32, i32, i32, i32) {
    %c0_i32 = arith.constant 0 : i32
    %c0_i32_0 = arith.constant 0 : i32
    %c0_i32_1 = arith.constant 0 : i32
    %c0_i32_2 = arith.constant 0 : i32
    return %arg0, %c0_i32, %c0_i32_0, %c0_i32_1 : i32, i32, i32, i32
  }
  func.func @transform_3(%arg0: i32) -> (i32, i32) {
    %c0_i32 = arith.constant 0 : i32
    %c0_i32_0 = arith.constant 0 : i32
    %c0_i32_1 = arith.constant 0 : i32
    return %c0_i32, %c0_i32_0 : i32, i32
  }
  func.func @transform_4(%arg0: i32) -> (i32, i32) {
    %c0_i32 = arith.constant 0 : i32
    %c0_i32_0 = arith.constant 0 : i32
    return %arg0, %c0_i32 : i32, i32
  }
}

</mosaic_0001>

<bundles_post_ra>
// kernel: tpu_custom_call.1
= control target key start
LH: loop header
LB: loop body
LE: loop exit
PB: predicated region body
PF: predicated region fallthrough
CT: control target
= control target key end

     0   :  { %9 = vsyncpa [#allocation3], 0  ;;  %s4828_s0 = inlined_call_operand.hbm [shape: f32[1,32], index: 0, kind: input, shape index: {}]   ;;  %s4829_s1 = inlined_call_operand.vmem [shape: f32[1,32], index: 1, kind: input, shape index: {}]   ;;  %s4830_s2 = inlined_call_operand.hbm [shape: f32[2,8,32,64], index: 2, kind: input, shape index: {}]   ;;  %s4831_s3 = inlined_call_operand.hbm [shape: f32[16,2048], index: 3, kind: input, shape index: {}]   ;;  %s4832_s4 = inlined_call_operand.hbm [shape: f32[16,2048], index: 4, kind: output, shape index: {}]  }
   0x1   :  { %10 = vsyncpa [#allocation6], 0 }
   0x2   :  { %12 = vsyncpa [#allocation6 + $0x1], 0 }
   0x3   :  { %13 = vsyncpa [#allocation4], 0 }
   0x4   :  { %15 = vsyncpa [#allocation4 + $0x1], 0  ;;  %s2885_s15 = smov 0   ;;  %s2887_s16 = smov 0  }
   0x5   :  { %s2889_s17 = smov 0   ;;  %s2891_s18 = smov 0  }
   0x6 LB: > { %s2906_s19 = sadd.s32 4294967295, %s2849_s18   ;;  %s2581_s20 = sadd.s32 4294967294, %s2849_s18   ;;  %s2849_s18 = sphi %s2891_s18, %s4993_s18   ;;  %s2845_s17 = sphi %s2889_s17, %s4992_s17   ;;  %s2841_s16 = sphi %s2887_s16, %s4991_s16   ;;  %s2837_s15 = sphi %s2885_s15, %s4990_s15  }
   0x7   : > { %s2910_s21 = sadd.s32 1, %s2849_s18   ;;  %s70_s22 = sadd.s32 1, %s2845_s17 }
   0x8   : > { %s67_s23 = ssub.s32 %s2849_s18, %s2910_s21  ;;  %p77_p0 = scmp.ne.s32.totalorder %s2845_s17, %s2841_s16 }
   0x9   : > { %p68_p1 = scmp.eq.s32.totalorder %s67_s23, 0  ;;  %p78_p2 = scmp.eq.s32.totalorder %s2849_s18, 0 }
   0xa   : > { %p83_p3 = scmp.ne.s32.totalorder %s2841_s16, %s2837_s15  ;;  %p4833_p4 = scmp.eq.s32.totalorder %s2906_s19, 0 }
   0xb   : > { %s2922_s24 = scalar_select %p68_p1, %s2845_s17, %s70_s22  }
   0xc   : > { %p2924_p5 = por %p78_p2, %p77_p0  ;;  %p2930_p6 = por %p4833_p4, %p83_p3 }
   0xd   : > { %p128_p7 = scmp.eq.s32.totalorder %s2906_s19, 1  ;;  %p134_p8 = scmp.eq.s32.totalorder %s2581_s20, 1 }
   0xe   : > { %s4854_s26 = scalar_select %p2930_p6, 1, 0 }
   0xf   : > { %p2582_p9 = scmp.ge.s32.totalorder %s2849_s18, 1  ;;  %p141_p10 = scmp.lt.s32.totalorder %s2849_s18, 3 }
  0x10   : > { %p2937_p11 = por %p128_p7, %p77_p0  ;;  %p2941_p12 = por %p134_p8, %p83_p3 }
  0x11   : > { %p2945_p13 = pnand %p2582_p9, %p141_p10  ;;  %s2851_s30 = smov [#allocation7]  }
  0x12   : > { %s4855_s27 = scalar_select %p2937_p11, 1, 0 }
  0x13   : > { %s4856_s28 = scalar_select %p2941_p12, 1, 0 }
  0x14   : > { %s4857_s29 = scalar_select %p2945_p13, 1, 0 }
  0x15   : > { %p2625_p2 = pneg %p2945_p13  ;;  %s168_s5 = sshll.u32 %s2851_s30, 4  ;;  %s169_s5 = int_to_ptr.vmem [resolvable:$true] %s168_s5 }
  0x16   : > { %p2642_p4 = scmp.lt.s32.totalorder %s2849_s18, 2  ;;  %p4858_p0 = scmp.eq.s32.totalorder %s2906_s19, 0 }
  0x17   : > { %s2852_s8 = smov [#allocation2]   ;;  %s2689_s12 = scalar_lea.hbm %s4831_s3, 2048 }
  0x18   : > { %p2955_p7 = pnand %p2625_p2, %p4858_p0  ;;  %p2961_p3 = pnand %p2642_p4, %p2924_p5 }
  0x19   : > { %s154_s9 = sshll.u32 %s2852_s8, 4  ;;  %p2690_p8 = scmp.ne.s32.totalorder %s4831_s3, %s2689_s12  ;;  %s2965_s9 = int_to_ptr.vmem [resolvable:$true] %s154_s9 }
  0x1a   : > { %s4860_s7 = scalar_select %p2961_p3, 1, 0 }
  0x1b   : > { %p2691_p9 = pneg %p2955_p7  ;;  %s2694_s23 = scalar_lea.hbm %s4831_s3, 4096 }
  0x1c   : > { %p2695_p10 = scmp.lt.u32.totalorder %s2694_s23, %s2689_s12  ;;  %p2696_p2 = scmp.lt.u32.totalorder %s2689_s12, %s4831_s3 }
  0x1d   : > { %p2692_p4 = pnand %p2691_p9, %p2690_p8 }
  0x1e   : > { %p2697_p0 = por %p2696_p2, %p2695_p10 }
  0x1f   : > { %p2693_p5 = pneg %p2692_p4 }
  0x21   : > { %p2698_p1 = pnand %p2697_p0, %p2693_p5 }
  0x23   : > { %2701 = shalt.err (!%p2698_p1)
}
  0x24   : > { %s2702_s8 = scalar_lea.vmem %s169_s5, 2048  ;;  %p2710_p4 = scmp.lt.s32.totalorder %s169_s5, %s169_s5 }
  0x25   : > { %p2703_p12 = scmp.ne.s32.totalorder %s169_s5, %s2702_s8  ;;  %p2711_p6 = scmp.lt.s32.totalorder %s2702_s8, %s2702_s8 }
  0x27   : > { %p2705_p11 = pnand %p2703_p12, %p2691_p9  ;;  %p2712_p13 = por %p2711_p6, %p2710_p4 }
  0x29   : > { %p2706_p8 = pneg %p2705_p11 }
  0x2b   : > { %p2713_p3 = pnand %p2712_p13, %p2706_p8 }
  0x2d   : > { %2716 = shalt.err (!%p2713_p3)
}
  0x2e   : > { %2631 = dma.hbm_to_vmem [thread:$0]  (!%p2955_p7), %s4831_s3, 2048, %s169_s5, [#allocation6]  }
  0x2f   : > { %s179_s12 = sand.u32 1, %s2849_s18   ;;  %s2717_s20 = scalar_lea.hbm %s4828_s0, 16 }
  0x30   : > { %p2718_p11 = scmp.ne.s32.totalorder %s4828_s0, %s2717_s20  ;;  %p2724_p13 = scmp.lt.u32.totalorder %s2717_s20, %s4828_s0 }
  0x32   : > { %p2720_p6 = pnand %p2718_p11, %p2691_p9 }
  0x34   : > { %p2721_p12 = pneg %p2720_p6 }
  0x36   : > { %p2726_p1 = pnand %p2724_p13, %p2721_p12 }
  0x38   : > { %2729 = shalt.err (!%p2726_p1)
}
  0x39   : > { %s2730_s5 = scalar_lea.vmem %s2965_s9, 16  ;;  %s2737_s8 = scalar_lea.vmem %s2965_s9, 32 }
  0x3a   : > { %p2731_p3 = scmp.ne.s32.totalorder %s2965_s9, %s2730_s5  ;;  %p2738_p2 = scmp.lt.s32.totalorder %s2965_s9, %s2965_s9 }
  0x3b   : > { %p2739_p0 = scmp.lt.s32.totalorder %s2737_s8, %s2730_s5 }
  0x3c   : > { %p2733_p5 = pnand %p2731_p3, %p2691_p9 }
  0x3d   : > { %p2740_p8 = por %p2739_p0, %p2738_p2 }
  0x3e   : > { %p2734_p10 = pneg %p2733_p5 }
  0x40   : > { %p2741_p4 = pnand %p2740_p8, %p2734_p10 }
  0x42   : > { %2744 = shalt.err (!%p2741_p4)
}
  0x43   : > { %2628 = dma.hbm_to_vmem [thread:$0]  (!%p2955_p7), %s4828_s0, 16, %s2965_s9, [#allocation3]  }
  0x44   : > { %s181_s13 = sand.u32 1, %s2845_s17   ;;  %s2604_s20 = sshll.u32 %s2849_s18, 12 }
  0x45   : > { %s2586_s14 = sshll.u32 %s181_s13, 8  ;;  %s3024_s25 = scalar_lea.hbm %s4830_s2, %s2604_s20 }
  0x46   : > { %s183_s6 = scalar_lea.vmem [#allocation5], %s2586_s14  ;;  %s3028_s5 = scalar_lea.sflag [#allocation6], %s179_s12 }
  0x47   : > { %s190_s30 = sshll.u32 %s183_s6, 4  ;;  %s2745_s8 = scalar_lea.hbm %s3024_s25, 4096  ;;  %s3026_s30 = int_to_ptr.vmem [resolvable:$true] %s190_s30 }
  0x48   : > { %p2746_p7 = scmp.ne.s32.totalorder %s3024_s25, %s2745_s8  ;;  %p4861_p9 = scmp.ne.s32.totalorder %s4860_s7, 0 }
  0x49   : > { %s2750_s11 = scalar_lea.hbm %s4830_s2, 8192  ;;  %p2751_p13 = scmp.lt.u32.totalorder %s3024_s25, %s4830_s2 }
  0x4a   : > { %p2747_p11 = pneg %p4861_p9  ;;  %p2752_p1 = scmp.lt.u32.totalorder %s2750_s11, %s2745_s8 }
  0x4b   : > { %p2754_p5 = scmp.lt.u32.totalorder %s2745_s8, %s3024_s25 }
  0x4c   : > { %p2748_p6 = pnand %p2747_p11, %p2746_p7  ;;  %p2753_p3 = por %p2752_p1, %p2751_p13 }
  0x4e   : > { %p2749_p12 = pneg %p2748_p6  ;;  %p2755_p10 = por %p2754_p5, %p2753_p3 }
  0x50   : > { %p2756_p2 = pnand %p2755_p10, %p2749_p12 }
  0x52   : > { %2759 = shalt.err (!%p2756_p2)
}
  0x53   : > { %s2760_s12 = scalar_lea.vmem %s3026_s30, 4096  ;;  %s2853_s14 = smov [#allocation5]  }
  0x54   : > { %p2761_p0 = scmp.ne.s32.totalorder %s3026_s30, %s2760_s12  ;;  %s2765_s22 = sshll.u32 %s2853_s14, 4  ;;  %s2766_s22 = int_to_ptr.vmem [resolvable:$false] %s2765_s22 }
  0x55   : > { %s2767_s23 = scalar_lea.vmem %s2766_s22, 8192  ;;  %p2768_p7 = scmp.lt.s32.totalorder %s3026_s30, %s2766_s22 }
  0x56   : > { %p2763_p8 = pnand %p2761_p0, %p2747_p11  ;;  %p2769_p6 = scmp.lt.s32.totalorder %s2767_s23, %s2760_s12 }
  0x58   : > { %p2764_p4 = pneg %p2763_p8  ;;  %p2770_p13 = por %p2769_p6, %p2768_p7 }
  0x5a   : > { %p2771_p1 = pnand %p2770_p13, %p2764_p4 }
  0x5c   : > { %2774 = shalt.err (!%p2771_p1)
}
  0x5d   : > { %s2854_s6 = smov 128   ;;  %s2855_s8 = smov 8  }
  0x5e   : > { %2635 = dma.hbm_to_vmem [thread:$0]  (!%p4861_p9), %s3024_s25, 4096, %s3026_s30, %s3028_s5, %s2854_s6, %s2854_s6, %s2855_s8  }
  0x5f   : > { %p4862_p11 = scmp.ne.s32.totalorder %s4857_s29, 0 }
  0x61   : > { %202 = sbr.rel (%p4862_p11) target bundleno = 1786 (0x6fa), region = 36 }
  0x68   : > { %p4863_p12 = scmp.eq.s32.totalorder %s2906_s19, 0 }
  0x6a   : > { %2820 = dma.done.wait (%p4863_p12), [#allocation3], 16   ;;  %p4864_p3 = pmov %p4863_p12 }
  0x6b   : > { %s208_s9 = sand.u32 1, %s2906_s19   ;;  %s3064_s10 = sand.u32 1, %s2841_s16  }
  0x6c   : > { %2822 = vsyncadd (%p4864_p3), [#allocation3], 4294967280  ;;  %s2591_s11 = sshll.u32 %s3064_s10, 8  ;;  %s209_s13 = scalar_lea.sflag [#allocation6], %s208_s9 }
  0x6d   : > { %s3067_s7 = scalar_lea.vmem [#allocation5], %s2591_s11  ;;  %p4865_p9 = scmp.ne.s32.totalorder %s4854_s26, 0 }
  0x6f   : > { %2824 = dma.done.wait (%p4865_p9), %s209_s13, 4096  }
  0x70   : > { %2826 = vsyncadd (%p4865_p9), %s209_s13, 4294963200  ;;  %p4866_p5 = pmov %p4864_p3 }
  0x71   : > { %p4867_p10 = pmov %p4864_p3 }
  0x72   : > { %2828 = dma.done.wait (%p4866_p5), [#allocation6], 2048  }
  0x73   : > { %2830 = vsyncadd (%p4867_p10), [#allocation6], 4294965248  ;;  %vm273_vm0 = vcmask 523264   ;;  %v245_v0 = vld [vmem:[%s3067_s7 + $0x20] sm:$0xff]  ;;  %v246_v2 = vld [vmem:[%s3067_s7 + $0x28] sm:$0xff]  ;;  %vm446_vm1 = vcmask 130112  }
  0x74   : > { %v241_v1 = vld [vmem:[%s3067_s7] sm:$0xff]  ;;  %v286_v3 = vsel %vm273_vm0, %v245_v0, 0.0  ;;  %v242_v5 = vld [vmem:[%s3067_s7 + $0x8] sm:$0xff]  ;;  %v289_v6 = vsel %vm273_vm0, %v246_v2, 0.0  ;;  %v247_v8 = vld [vmem:[%s3067_s7 + $0x30] sm:$0xff]  ;;  %vm453_vm2 = vcmask 195712  }
  0x75   : > { %v274_v4 = vsel %vm273_vm0, %v241_v1, 0.0  ;;  %287 = vadd.xlane.f32.xlu1 %v286_v3  ;;  %v277_v7 = vsel %vm273_vm0, %v242_v5, 0.0  ;;  %v243_v9 = vld [vmem:[%s3067_s7 + $0x10] sm:$0xff]  ;;  %v292_v10 = vsel %vm273_vm0, %v247_v8, 0.0  ;;  %v250_v12 = vld [vmem:[%s3067_s7 + $0x48] sm:$0xff]  ;;  %v249_v13 = vld [vmem:[%s3067_s7 + $0x40] sm:$0xff] }
  0x76   : > { %275 = vadd.xlane.f32.xlu0 %v274_v4  ;;  %v280_v11 = vsel %vm273_vm0, %v243_v9, 0.0  ;;  %v301_v14 = vsel %vm273_vm0, %v250_v12, 0.0  ;;  %v298_v15 = vsel %vm273_vm0, %v249_v13, 0.0  ;;  %v248_v16 = vld [vmem:[%s3067_s7 + $0x38] sm:$0xff]  ;;  %v253_v20 = vld [vmem:[%s3067_s7 + $0x60] sm:$0xff]  ;;  %v251_v21 = vld [vmem:[%s3067_s7 + $0x50] sm:$0xff] }
  0x77   : > { %v244_v17 = vld [vmem:[%s3067_s7 + $0x18] sm:$0xff]  ;;  %v295_v18 = vsel %vm273_vm0, %v248_v16, 0.0  ;;  %v310_v22 = vsel %vm273_vm0, %v253_v20, 0.0  ;;  %v304_v23 = vsel %vm273_vm0, %v251_v21, 0.0  ;;  %v254_v25 = vld [vmem:[%s3067_s7 + $0x68] sm:$0xff]  ;;  %v257_v28 = vld [vmem:[%s3067_s7 + $0x80] sm:$0xff] }
  0x78   : > { %v283_v19 = vsel %vm273_vm0, %v244_v17, 0.0  ;;  %v252_v24 = vld [vmem:[%s3067_s7 + $0x58] sm:$0xff]  ;;  %v313_v27 = vsel %vm273_vm0, %v254_v25, 0.0  ;;  %v255_v29 = vld [vmem:[%s3067_s7 + $0x70] sm:$0xff]  ;;  %v322_v30 = vsel %vm273_vm0, %v257_v28, 0.0  ;;  %v258_v33 = vld [vmem:[%s3067_s7 + $0x88] sm:$0xff] }
  0x79   : > { %290 = vadd.xlane.f32.xlu1 %v289_v6  ;;  %v307_v26 = vsel %vm273_vm0, %v252_v24, 0.0  ;;  %v316_v31 = vsel %vm273_vm0, %v255_v29, 0.0  ;;  %v256_v32 = vld [vmem:[%s3067_s7 + $0x78] sm:$0xff]  ;;  %v325_v35 = vsel %vm273_vm0, %v258_v33, 0.0  ;;  %v261_v36 = vld [vmem:[%s3067_s7 + $0xa0] sm:$0xff]  ;;  %v259_v37 = vld [vmem:[%s3067_s7 + $0x90] sm:$0xff] }
  0x7a   : > { %278 = vadd.xlane.f32.xlu0 %v277_v7  ;;  %v319_v34 = vsel %vm273_vm0, %v256_v32, 0.0  ;;  %v334_v38 = vsel %vm273_vm0, %v261_v36, 0.0  ;;  %v328_v39 = vsel %vm273_vm0, %v259_v37, 0.0  ;;  %v260_v40 = vld [vmem:[%s3067_s7 + $0x98] sm:$0xff]  ;;  %v262_v41 = vld [vmem:[%s3067_s7 + $0xa8] sm:$0xff]  ;;  %v265_v44 = vld [vmem:[%s3067_s7 + $0xc0] sm:$0xff] }
  0x7b   : > { %v331_v42 = vsel %vm273_vm0, %v260_v40, 0.0  ;;  %v337_v43 = vsel %vm273_vm0, %v262_v41, 0.0  ;;  %v263_v45 = vld [vmem:[%s3067_s7 + $0xb0] sm:$0xff]  ;;  %v346_v46 = vsel %vm273_vm0, %v265_v44, 0.0  ;;  %v264_v48 = vld [vmem:[%s3067_s7 + $0xb8] sm:$0xff]  ;;  %v266_v49 = vld [vmem:[%s3067_s7 + $0xc8] sm:$0xff] }
  0x7c   : > { %v340_v47 = vsel %vm273_vm0, %v263_v45, 0.0  ;;  %v343_v50 = vsel %vm273_vm0, %v264_v48, 0.0  ;;  %v349_v51 = vsel %vm273_vm0, %v266_v49, 0.0  ;;  %v269_v52 = vld [vmem:[%s3067_s7 + $0xe0] sm:$0xff]  ;;  %v267_v53 = vld [vmem:[%s3067_s7 + $0xd0] sm:$0xff]  ;;  %v268_v56 = vld [vmem:[%s3067_s7 + $0xd8] sm:$0xff] }
  0x7d   : > { %293 = vadd.xlane.f32.xlu1 %v292_v10  ;;  %v358_v54 = vsel %vm273_vm0, %v269_v52, 0.0  ;;  %v352_v55 = vsel %vm273_vm0, %v267_v53, 0.0  ;;  %v270_v57 = vld [vmem:[%s3067_s7 + $0xe8] sm:$0xff]  ;;  %v355_v58 = vsel %vm273_vm0, %v268_v56, 0.0  ;;  %v271_v60 = vld [vmem:[%s3067_s7 + $0xf0] sm:$0xff]  ;;  %v272_v61 = vld [vmem:[%s3067_s7 + $0xf8] sm:$0xff] }
  0x7e   : > { %281 = vadd.xlane.f32.xlu0 %v280_v11  ;;  %v361_v59 = vsel %vm273_vm0, %v270_v57, 0.0  ;;  %v364_v62 = vsel %vm273_vm0, %v271_v60, 0.0  ;;  %v367_v63 = vsel %vm273_vm0, %v272_v61, 0.0  ;;  %vm460_vm3 = vcmask 261312   ;;  %s2593_s25 = sshll.u32 %s3064_s10, 7  ;;  %s2605_s30 = sshll.u32 %s2906_s19, 11 }
  0x7f   : > { %vm595_vm4 = vcmask 1041409   ;;  %vm597_vm5 = vcmask 1042434   ;;  %vm599_vm6 = vcmask 1043459   ;;  %vm601_vm7 = vcmask 1044484   ;;  %s4682_s5 = scalar_lea.vmem [#allocation8], %s2593_s25  ;;  %s4756_s14 = scalar_lea.hbm %s4832_s4, %s2605_s30 }
  0x80   : > { %vm603_vm8 = vcmask 1045509   ;;  %vm605_vm9 = vcmask 1046534   ;;  %vm607_vm10 = vcmask 1047559   ;;  %vm610_vm11 = vcmask 261120   ;;  %s2490_s20 = sshll.u32 %s4682_s5, 4  ;;  %s2476_s22 = scalar_lea.sflag [#allocation4], %s3064_s10  ;;  %s4758_s20 = int_to_ptr.vmem [resolvable:$true] %s2490_s20 }
  0x81   : > { %302 = vadd.xlane.f32.xlu1 %v301_v14  ;;  %v435_v14 = vlaneseq  ;;  %vm2858_vm12 = vmmov 0   ;;  %vm1567_vm14 = vcmask 64512   ;;  %s2775_s23 = scalar_lea.vmem %s4758_s20, 2048  ;;  %p4987_p0 = scmp.ne.s32.totalorder %s4855_s27, 0 }
  0x82   : > { %299 = vadd.xlane.f32.xlu0 %v298_v15  ;;  %p2776_p2 = scmp.ne.s32.totalorder %s4758_s20, %s2775_s23  ;;  %s2859_s6 = smov [#allocation8]  }
  0x83   : > { %v3143_v17 = vand.u32 127, %v435_v14  ;;  %s2779_s8 = sshll.u32 %s2859_s6, 4  ;;  %s2780_s8 = int_to_ptr.vmem [resolvable:$false] %s2779_s8 }
  0x84   : > { %p2777_p8 = pnand %p2776_p2, %p4987_p0  ;;  %s2781_s9 = scalar_lea.vmem %s2780_s8, 4096 }
  0x85   : > { %296 = vadd.xlane.f32.xlu1 %v295_v18  ;;  %4868 = vst [vmem:[#allocation13_spill] sm:$0xff] %v3143_v17  ;;  %v3145_v18 = vshrl.u32 %v435_v14, 7  ;;  %v441_v21 = vadd.s32 4294967288, %v3143_v17  ;;  %p2782_p7 = scmp.lt.s32.totalorder %s4758_s20, %s2780_s8  ;;  %p2783_p6 = scmp.lt.s32.totalorder %s2781_s9, %s2775_s23 }
  0x86   : > { %284 = vadd.xlane.f32.xlu0 %v283_v19  ;;  %p2778_p4 = pneg %p2777_p8 }
  0x87   : > { %4869 = vst [vmem:[#allocation14_spill] sm:$0xff] %v3145_v18  ;;  %v3152_v24 = vsub.s32 %v3143_v17, %v3145_v18  ;;  %v3159_v28 = vsub.s32 %v441_v21, %v3145_v18  ;;  %p2784_p13 = por %p2783_p6, %p2782_p7 }
  0x89   : > { %311 = vadd.xlane.f32.xlu1 %v310_v22  ;;  %v448_v22 = vadd.s32 4294967280, %v3143_v17  ;;  %p2785_p1 = pnand %p2784_p13, %p2778_p4 }
  0x8a   : > { %305 = vadd.xlane.f32.xlu0 %v304_v23  ;;  %v455_v23 = vadd.s32 4294967272, %v3143_v17 }
  0x8d   : > { %308 = vadd.xlane.f32.xlu1 %v307_v26 }
  0x8e   : > { %314 = vadd.xlane.f32.xlu0 %v313_v27 }
  0x91   : > { %323 = vadd.xlane.f32.xlu1 %v322_v30 }
  0x92   : > { %317 = vadd.xlane.f32.xlu0 %v316_v31  ;;  %v3166_v31 = vsub.s32 %v448_v22, %v3145_v18 }
  0x95   : > { %320 = vadd.xlane.f32.xlu1 %v319_v34 }
  0x96   : > { %326 = vadd.xlane.f32.xlu0 %v325_v35  ;;  %v3175_v35 = vsub.s32 %v455_v23, %v3145_v18 }
  0x99   : > { %335 = vadd.xlane.f32.xlu1 %v334_v38 }
  0x9a   : > { %329 = vadd.xlane.f32.xlu0 %v328_v39 }
  0x9d   : > { %332 = vadd.xlane.f32.xlu1 %v331_v42 }
  0x9e   : > { %338 = vadd.xlane.f32.xlu0 %v337_v43 }
  0xa1   : > { %347 = vadd.xlane.f32.xlu1 %v346_v46 }
  0xa2   : > { %341 = vadd.xlane.f32.xlu0 %v340_v47 }
  0xa5   : > { %344 = vadd.xlane.f32.xlu1 %v343_v50 }
  0xa6   : > { %350 = vadd.xlane.f32.xlu0 %v349_v51 }
  0xa9   : > { %359 = vadd.xlane.f32.xlu1 %v358_v54 }
  0xaa   : > { %353 = vadd.xlane.f32.xlu0 %v352_v55 }
  0xad   : > { %356 = vadd.xlane.f32.xlu1 %v355_v58 }
  0xae   : > { %362 = vadd.xlane.f32.xlu0 %v361_v59 }
  0xb1   : > { %368 = vadd.xlane.f32.xlu1 %v367_v63 }
  0xb2   : > { %365 = vadd.xlane.f32.xlu0 %v364_v62 }
 0x102   : > { %v288_v0 = vpop.xlane.xlu1 %287 }
 0x103   : > { %v276_v1 = vpop.xlane.xlu0 %275  ;;  %v3156_v27 = vmul.f32 0.015625, %v288_v0 }
 0x104   : > { %v3172_v34 = vmul.f32 0.015625, %v276_v1 }
 0x105   : > { %v465_v40 = vrot.slane %v3156_v27, %v3152_v24 }
 0x106   : > { %v291_v2 = vpop.xlane.xlu1 %290  ;;  %v440_v47 = vrot.slane %v3172_v34, %v3152_v24 }
 0x107   : > { %v279_v3 = vpop.xlane.xlu0 %278  ;;  %v3161_v29 = vmul.f32 0.015625, %v291_v2 }
 0x108   : > { %v3163_v30 = vmul.f32 0.015625, %v279_v3 }
 0x109   : > { %v469_v41 = vrot.slane %v3161_v29, %v3159_v28 }
 0x10a   : > { %v294_v4 = vpop.xlane.xlu1 %293  ;;  %v445_v42 = vrot.slane %v3163_v30, %v3159_v28 }
 0x10b   : > { %v282_v5 = vpop.xlane.xlu0 %281  ;;  %v3168_v32 = vmul.f32 0.015625, %v294_v4  ;;  %v470_v53 = vsel %vm446_vm1, %v469_v41, %v465_v40 }
 0x10c   : > { %v3170_v33 = vmul.f32 0.015625, %v282_v5  ;;  %v447_v54 = vsel %vm446_vm1, %v445_v42, %v440_v47 }
 0x10d   : > { %v474_v43 = vrot.slane %v3168_v32, %v3166_v31 }
 0x10e   : > { %v303_v6 = vpop.xlane.xlu1 %302  ;;  %v452_v44 = vrot.slane %v3170_v33, %v3166_v31 }
 0x10f   : > { %v300_v7 = vpop.xlane.xlu0 %299  ;;  %v3191_v45 = vmul.f32 0.015625, %v303_v6  ;;  %v475_v56 = vsel %vm453_vm2, %v474_v43, %v470_v53 }
 0x110   : > { %v3193_v46 = vmul.f32 0.015625, %v300_v7  ;;  %v454_v57 = vsel %vm453_vm2, %v452_v44, %v447_v54 }
 0x111   : > { %v488_v58 = vrot.slane %v3191_v45, %v3159_v28 }
 0x112   : > { %v297_v8 = vpop.xlane.xlu1 %296  ;;  %v484_v59 = vrot.slane %v3193_v46, %v3152_v24 }
 0x113   : > { %v285_v9 = vpop.xlane.xlu0 %284  ;;  %v3177_v36 = vmul.f32 0.015625, %v297_v8 }
 0x114   : > { %v3179_v37 = vmul.f32 0.015625, %v285_v9  ;;  %v489_v5 = vsel %vm446_vm1, %v488_v58, %v484_v59 }
 0x115   : > { %v479_v48 = vrot.slane %v3177_v36, %v3175_v35 }
 0x116   : > { %v312_v10 = vpop.xlane.xlu1 %311  ;;  %v459_v49 = vrot.slane %v3179_v37, %v3175_v35 }
 0x117   : > { %v306_v11 = vpop.xlane.xlu0 %305  ;;  %v480_v60 = vsel %vm460_vm3, %v479_v48, %v475_v56  ;;  %v3221_v3 = vmul.f32 0.015625, %v312_v10 }
 0x118   : > { %v3201_v50 = vmul.f32 0.015625, %v306_v11  ;;  %v461_v61 = vsel %vm460_vm3, %v459_v49, %v454_v57 }
 0x119   : > { %v596_v6 = vsel %vm595_vm4, %v480_v60, %v461_v61  ;;  %v503_v22 = vrot.slane %v3221_v3, %v3152_v24 }
 0x11a   : > { %v309_v12 = vpop.xlane.xlu1 %308  ;;  %v493_v62 = vrot.slane %v3201_v50, %v3166_v31 }
 0x11b   : > { %v315_v13 = vpop.xlane.xlu0 %314  ;;  %v3205_v55 = vmul.f32 0.015625, %v309_v12 }
 0x11c   : > { %v3217_v63 = vmul.f32 0.015625, %v315_v13  ;;  %v494_v8 = vsel %vm453_vm2, %v493_v62, %v489_v5 }
 0x11d   : > { %v498_v4 = vrot.slane %v3205_v55, %v3175_v35 }
 0x11e   : > { %v324_v15 = vpop.xlane.xlu1 %323  ;;  %v507_v9 = vrot.slane %v3217_v63, %v3159_v28 }
 0x11f   : > { %v3141_v16 = vpop.xlane.xlu0 %317  ;;  %v3227_v7 = vmul.f32 0.015625, %v324_v15 }
 0x120   : > { %v3233_v11 = vmul.f32 0.015625, %v3141_v16  ;;  %v499_v16 = vsel %vm460_vm3, %v498_v4, %v494_v8  ;;  %v508_v41 = vsel %vm446_vm1, %v507_v9, %v503_v22 }
 0x122   : > { %v321_v19 = vpop.xlane.xlu1 %320  ;;  %v512_v42 = vrot.slane %v3233_v11, %v3166_v31 }
 0x123   : > { %v327_v20 = vpop.xlane.xlu0 %326  ;;  %v3237_v12 = vmul.f32 0.015625, %v321_v19  ;;  %v522_v19 = vrot.slane %v3227_v7, %v3152_v24 }
 0x124   : > { %v3219_v0 = vmul.f32 0.015625, %v327_v20  ;;  %v513_v62 = vsel %vm453_vm2, %v512_v42, %v508_v41 }
 0x126   : > { %v3154_v25 = vpop.xlane.xlu1 %335  ;;  %v526_v13 = vrot.slane %v3219_v0, %v3159_v28 }
 0x127   : > { %v330_v26 = vpop.xlane.xlu0 %329 }
 0x128   : > { %v3235_v10 = vmul.f32 0.015625, %v330_v26  ;;  %v527_v47 = vsel %vm446_vm1, %v526_v13, %v522_v19 }
 0x12a   : > { %v333_v38 = vpop.xlane.xlu1 %332  ;;  %v531_v43 = vrot.slane %v3235_v10, %v3166_v31 }
 0x12b   : > { %v339_v39 = vpop.xlane.xlu0 %338  ;;  %v3241_v14 = vmul.f32 0.015625, %v333_v38  ;;  %v3255_v38 = vmul.f32 0.015625, %v3154_v25  ;;  %v517_v25 = vrot.slane %v3237_v12, %v3175_v35 }
 0x12c   : > { %v3243_v15 = vmul.f32 0.015625, %v339_v39 }
 0x12d   : > { %v536_v48 = vrot.slane %v3241_v14, %v3175_v35  ;;  %v541_v58 = vrot.slane %v3255_v38, %v3152_v24  ;;  %v518_v5 = vsel %vm460_vm3, %v517_v25, %v513_v62 }
 0x12e   : > { %v348_v51 = vpop.xlane.xlu1 %347  ;;  %v545_v49 = vrot.slane %v3243_v15, %v3159_v28 }
 0x12f   : > { %v342_v52 = vpop.xlane.xlu0 %341  ;;  %v3266_v44 = vmul.f32 0.015625, %v348_v51 }
 0x130   : > { %v3248_v23 = vmul.f32 0.015625, %v342_v52  ;;  %v546_v9 = vsel %vm446_vm1, %v545_v49, %v541_v58 }
 0x132   : > { %v345_v1 = vpop.xlane.xlu1 %344  ;;  %v550_v54 = vrot.slane %v3248_v23, %v3166_v31 }
 0x133   : > { %v351_v2 = vpop.xlane.xlu0 %350  ;;  %v3257_v39 = vmul.f32 0.015625, %v345_v1  ;;  %v532_v1 = vsel %vm453_vm2, %v531_v43, %v527_v47  ;;  %v598_v43 = vsel %vm597_vm5, %v499_v16, %v596_v6 }
 0x134   : > { %v3250_v26 = vmul.f32 0.015625, %v351_v2  ;;  %v560_v2 = vrot.slane %v3266_v44, %v3152_v24  ;;  %v537_v8 = vsel %vm460_vm3, %v536_v48, %v532_v1  ;;  %v551_v22 = vsel %vm453_vm2, %v550_v54, %v546_v9 }
 0x135   : > { %v555_v59 = vrot.slane %v3257_v39, %v3175_v35  ;;  %v600_v54 = vsel %vm599_vm6, %v518_v5, %v598_v43  ;;  %v3331_v5 = vsub.s32 2, %v3145_v18 }
 0x136   : > { %v360_v20 = vpop.xlane.xlu1 %359  ;;  %v564_v51 = vrot.slane %v3250_v26, %v3159_v28  ;;  %v602_v6 = vsel %vm601_vm7, %v537_v8, %v600_v54  ;;  %v3334_v8 = vsub.s32 1, %v3145_v18 }
 0x137   : > { %v354_v21 = vpop.xlane.xlu0 %353  ;;  %v3287_v60 = vmul.f32 0.015625, %v360_v20  ;;  %v556_v48 = vsel %vm460_vm3, %v555_v59, %v551_v22 }
 0x138   : > { %v3259_v40 = vmul.f32 0.015625, %v354_v21  ;;  %v565_v19 = vsel %vm446_vm1, %v564_v51, %v560_v2  ;;  %v604_v58 = vsel %vm603_vm8, %v556_v48, %v602_v6  ;;  %v2856_v2 = vmov 0  }
 0x139   : > { %v579_v25 = vrot.slane %v3287_v60, %v3152_v24  ;;  %2686 = vset.pattern.permute.xlu0 %v2856_v2  ;;  %2685 = vset.pattern.permute.xlu1 %v2856_v2 }
 0x13a   : > { %v357_v52 = vpop.xlane.xlu1 %356  ;;  %v569_v61 = vrot.slane %v3259_v40, %v3166_v31 }
 0x13b   : > { %v363_v53 = vpop.xlane.xlu0 %362  ;;  %v3279_v56 = vmul.f32 0.015625, %v357_v52 }
 0x13c   : > { %v3281_v57 = vmul.f32 0.015625, %v363_v53  ;;  %v570_v47 = vsel %vm453_vm2, %v569_v61, %v565_v19 }
 0x13d   : > { %v574_v4 = vrot.slane %v3279_v56, %v3175_v35 }
 0x13e   : > { %v583_v13 = vrot.slane %v3281_v57, %v3159_v28  ;;  %v369_v21 = vpop.xlane.xlu1 %368 }
 0x13f   : > { %v366_v20 = vpop.xlane.xlu0 %365  ;;  %v3306_v42 = vmul.f32 0.015625, %v369_v21  ;;  %v575_v53 = vsel %vm460_vm3, %v574_v4, %v570_v47  ;;  %v3328_v4 = vsub.s32 0, %v3145_v18 }
 0x140   : > { %v3304_v41 = vmul.f32 0.015625, %v366_v20  ;;  %v584_v51 = vsel %vm446_vm1, %v583_v13, %v579_v25  ;;  %v606_v61 = vsel %vm605_vm9, %v575_v53, %v604_v58  ;;  %v3339_v20 = vsub.s32 3, %v3145_v18 }
 0x141   : > { %v593_v52 = vrot.slane %v3306_v42, %v3175_v35 }
 0x142   : > { %v588_v49 = vrot.slane %v3304_v41, %v3166_v31 }
 0x144   : > { %v589_v16 = vsel %vm453_vm2, %v588_v49, %v584_v51 }
 0x145   : > { %v594_v59 = vsel %vm460_vm3, %v593_v52, %v589_v16 }
 0x146   : > { %v608_v62 = vsel %vm607_vm10, %v594_v59, %v606_v61 }
 0x147   : > { %v611_v1 = vsel %vm610_vm11, %v608_v62, 0.0 }
 0x148   : > { %612 = vadd.xlane.f32.xlu0 %v611_v1 }
 0x1d5   : > { %v613_v9 = vpop.xlane.xlu0 %612 }
 0x1d6   : > { %v3336_v13 = vmul.f32 0.03125, %v613_v9 }
 0x1d8   : > { %v620_v21 = vrot.slane %v3336_v13, %v3328_v4  ;;  %v3345_v22 = vrot.slane %v3336_v13, %v3331_v5  ;;  %v624_v19 = vrot.slane %v3336_v13, %v3334_v8  ;;  %v3357_v47 = vrot.slane %v3336_v13, %v3339_v20 }
 0x1da   : > { %v3350_v43 = vsub.f32 %v3163_v30, %v620_v21  ;;  %v3353_v25 = vsub.f32 %v3172_v34, %v620_v21  ;;  %v3365_v52 = vsub.f32 %v3201_v50, %v3345_v22  ;;  %v3368_v30 = vsub.f32 %v3156_v27, %v624_v19 }
 0x1db   : > { %v3371_v34 = vsub.s32 4, %v3145_v18  ;;  %v3379_v51 = vsub.f32 %v3217_v63, %v3357_v47  ;;  %v3382_v50 = vsub.f32 %v3161_v29, %v624_v19  ;;  %v3394_v58 = vsub.f32 %v3233_v11, %v3357_v47 }
 0x1dc   : > { %v690_v48 = vmul.f32 %v3350_v43, %v3350_v43  ;;  %v689_v49 = vmul.f32 %v3353_v25, %v3353_v25  ;;  %v699_v53 = vmul.f32 %v3365_v52, %v3365_v52  ;;  %v693_v54 = vmul.f32 %v3368_v30, %v3368_v30 }
 0x1dd   : > { %v3386_v27 = vrot.slane %v3336_v13, %v3371_v34  ;;  %v702_v6 = vmul.f32 %v3379_v51, %v3379_v51  ;;  %v694_v16 = vmul.f32 %v3382_v50, %v3382_v50  ;;  %v3397_v63 = vsub.f32 %v3170_v33, %v620_v21 }
 0x1de   : > { %757 = vperm.xlu0 %2686, %v690_v48   ;;  %754 = vperm.xlu1 %2685, %v689_v49   ;;  %v3400_v29 = vsub.s32 5, %v3145_v18  ;;  %v703_v59 = vmul.f32 %v3394_v58, %v3394_v58  ;;  %v3411_v11 = vsub.f32 %v3168_v32, %v624_v19  ;;  %v3428_v32 = vsub.s32 6, %v3145_v18 }
 0x1df   : > { %v691_v61 = vmul.f32 %v3397_v63, %v3397_v63  ;;  %v3408_v62 = vsub.f32 %v3219_v0, %v3386_v27  ;;  %v3421_v9 = vsub.f32 %v3235_v10, %v3386_v27  ;;  %v3425_v0 = vsub.f32 %v3193_v46, %v3345_v22 }
 0x1e0   : > { %v640_v33 = vrot.slane %v3336_v13, %v3400_v29  ;;  %v695_v2 = vmul.f32 %v3411_v11, %v3411_v11  ;;  %v3439_v10 = vsub.f32 %v3191_v45, %v3345_v22  ;;  %v644_v46 = vrot.slane %v3336_v13, %v3428_v32 }
 0x1e1   : > { %v706_v1 = vmul.f32 %v3408_v62, %v3408_v62  ;;  %v707_v48 = vmul.f32 %v3421_v9, %v3421_v9  ;;  %v697_v49 = vmul.f32 %v3425_v0, %v3425_v0  ;;  %v3454_v45 = vsub.s32 7, %v3145_v18 }
 0x1e2   : > { %784 = vperm.xlu0 %2686, %v699_v53   ;;  %766 = vperm.xlu1 %2685, %v693_v54   ;;  %v3435_v53 = vsub.f32 %v3243_v15, %v640_v33  ;;  %v3451_v15 = vsub.f32 %v3179_v37, %v620_v21 }
 0x1e3   : > { %4870 = vst [vmem:[#allocation15_spill] sm:$0xff] %v3454_v45  ;;  %v648_v37 = vrot.slane %v3336_v13, %v3454_v45 }
 0x1e4   : > { %v710_v54 = vmul.f32 %v3435_v53, %v3435_v53 }
 0x1e6   : > { %793 = vperm.xlu0 %2686, %v702_v6   ;;  %769 = vperm.xlu1 %2685, %v694_v16   ;;  %v698_v6 = vmul.f32 %v3439_v10, %v3439_v10  ;;  %v3448_v16 = vsub.f32 %v3248_v23, %v640_v33  ;;  %v3464_v23 = vsub.f32 %v3177_v36, %v624_v19 }
 0x1e7   : > { %v3484_v19 = vsub.f32 %v3281_v57, %v648_v37 }
 0x1e9   : > { %4872 = vst [vmem:[#allocation17_spill] sm:$0xff] %v3484_v19 }
 0x1ea   : > { %796 = vperm.xlu0 %2686, %v703_v59   ;;  %760 = vperm.xlu1 %2685, %v691_v61   ;;  %v711_v59 = vmul.f32 %v3448_v16, %v3448_v16  ;;  %v692_v61 = vmul.f32 %v3451_v15, %v3451_v15 }
 0x1ee   : > { %805 = vperm.xlu0 %2686, %v706_v1   ;;  %772 = vperm.xlu1 %2685, %v695_v2   ;;  %v3461_v1 = vsub.f32 %v3250_v26, %v644_v46  ;;  %v696_v2 = vmul.f32 %v3464_v23, %v3464_v23  ;;  %v3477_v26 = vsub.f32 %v3221_v3, %v3357_v47 }
 0x1ef   : > { %v718_v3 = vmul.f32 %v3484_v19, %v3484_v19 }
 0x1f0   : > { %v714_v21 = vmul.f32 %v3461_v1, %v3461_v1  ;;  %v701_v13 = vmul.f32 %v3477_v26, %v3477_v26 }
 0x1f2   : > { %808 = vperm.xlu0 %2686, %v707_v48   ;;  %778 = vperm.xlu1 %2685, %v697_v49   ;;  %v3473_v48 = vsub.f32 %v3259_v40, %v644_v46  ;;  %v3488_v49 = vsub.f32 %v3205_v55, %v3345_v22  ;;  %v3507_v22 = vsub.f32 %v3237_v12, %v3357_v47 }
 0x1f3   : > { %v3523_v47 = vsub.f32 %v3266_v44, %v644_v46  ;;  %v3538_v44 = vsub.f32 %v3279_v56, %v644_v46  ;;  %v2595_v56 = vld [vmem:[%s4829_s1] ss:$0 sm:$0xff] }
 0x1f4   : > { %4871 = vst [vmem:[#allocation16_spill] sm:$0xff] %v3473_v48  ;;  %v715_v36 = vmul.f32 %v3473_v48, %v3473_v48  ;;  %v700_v40 = vmul.f32 %v3488_v49, %v3488_v49 }
 0x1f5   : > { %4876 = vst [vmem:[#allocation21_spill] sm:$0xff] %v3523_v47  ;;  %4879 = vst [vmem:[#allocation24_spill] sm:$0xff] %v3538_v44 }
 0x1f6   : > { %817 = vperm.xlu0 %2686, %v710_v54   ;;  %781 = vperm.xlu1 %2685, %v698_v6   ;;  %v3495_v54 = vsub.f32 %v3304_v41, %v648_v37  ;;  %v3499_v6 = vsub.f32 %v3227_v7, %v3386_v27  ;;  %v704_v41 = vmul.f32 %v3507_v22, %v3507_v22 }
 0x1f7   : > { %v3512_v7 = vsub.f32 %v3255_v38, %v640_v33  ;;  %v713_v38 = vmul.f32 %v3523_v47, %v3523_v47 }
 0x1f8   : > { %4873 = vst [vmem:[#allocation18_spill] sm:$0xff] %v3495_v54  ;;  %v719_v55 = vmul.f32 %v3495_v54, %v3495_v54  ;;  %v705_v57 = vmul.f32 %v3499_v6, %v3499_v6 }
 0x1f9   : > { %4874 = vst [vmem:[#allocation19_spill] sm:$0xff] %v3512_v7 }
 0x1fa   : > { %820 = vperm.xlu0 %2686, %v711_v59   ;;  %763 = vperm.xlu1 %2685, %v692_v61   ;;  %v709_v59 = vmul.f32 %v3512_v7, %v3512_v7  ;;  %v3518_v61 = vsub.f32 %v3241_v14, %v3386_v27  ;;  %v3533_v14 = vsub.f32 %v3287_v60, %v648_v37  ;;  %v2594_v60 = vld [vmem:[#allocation2] ss:$0 sm:$0xff] }
 0x1fc   : > { %4875 = vst [vmem:[#allocation20_spill] sm:$0xff] %v3518_v61  ;;  %v708_v12 = vmul.f32 %v3518_v61, %v3518_v61  ;;  %4878 = vst [vmem:[#allocation23_spill] sm:$0xff] %v3533_v14  ;;  %v717_v27 = vmul.f32 %v3533_v14, %v3533_v14 }
 0x1fe   : > { %829 = vperm.xlu0 %2686, %v714_v21   ;;  %775 = vperm.xlu1 %2685, %v696_v2   ;;  %v3528_v21 = vsub.f32 %v3257_v39, %v640_v33  ;;  %v3543_v39 = vsub.f32 %v3306_v42, %v648_v37 }
 0x200   : > { %4877 = vst [vmem:[#allocation22_spill] sm:$0xff] %v3528_v21  ;;  %v712_v2 = vmul.f32 %v3528_v21, %v3528_v21  ;;  %4880 = vst [vmem:[#allocation25_spill] sm:$0xff] %v3543_v39  ;;  %v720_v33 = vmul.f32 %v3543_v39, %v3543_v39 }
 0x202   : > { %832 = vperm.xlu0 %2686, %v715_v36   ;;  %790 = vperm.xlu1 %2685, %v701_v13   ;;  %v716_v36 = vmul.f32 %v3538_v44, %v3538_v44 }
 0x206   : > { %841 = vperm.xlu0 %2686, %v718_v3   ;;  %787 = vperm.xlu1 %2685, %v700_v40  }
 0x20a   : > { %844 = vperm.xlu0 %2686, %v719_v55   ;;  %802 = vperm.xlu1 %2685, %v705_v57  }
 0x20e   : > { %799 = vperm.xlu1 %2685, %v704_v41  }
 0x212   : > { %814 = vperm.xlu1 %2685, %v709_v59  }
 0x216   : > { %811 = vperm.xlu1 %2685, %v708_v12  }
 0x21a   : > { %826 = vperm.xlu1 %2685, %v713_v38  }
 0x21e   : > { %823 = vperm.xlu1 %2685, %v712_v2  }
 0x222   : > { %838 = vperm.xlu1 %2685, %v717_v27  }
 0x226   : > { %835 = vperm.xlu1 %2685, %v716_v36  }
 0x22a   : > { %847 = vperm.xlu1 %2685, %v720_v33  }
 0x22e   : > { %1095 = vbcast.lane.b32.xlu1 %v2594_v60, 256 }
 0x232   : > { %1099 = vbcast.lane.b32.xlu1 %v2594_v60, 264 }
 0x236   : > { %1103 = vbcast.lane.b32.xlu1 %v2594_v60, 272 }
 0x23a   : > { %1107 = vbcast.lane.b32.xlu1 %v2594_v60, 280 }
 0x23e   : > { %1152 = vbcast.lane.b32.xlu1 %v2595_v56, 256 }
 0x242   : > { %1156 = vbcast.lane.b32.xlu1 %v2595_v56, 264 }
 0x246   : > { %1160 = vbcast.lane.b32.xlu1 %v2595_v56, 272 }
 0x24a   : > { %1164 = vbcast.lane.b32.xlu1 %v2595_v56, 280 }
 0x25d   : > { %v755_v42 = vpop.permute.xlu1 %754  ;;  %v758_v37 = vpop.permute.xlu0 %757 }
 0x25e   : > { %v856_v2 = vrot.slane %v758_v37, %v3159_v28  ;;  %v852_v27 = vrot.slane %v755_v42, %v3152_v24 }
 0x260   : > { %v857_v44 = vsel %vm446_vm1, %v856_v2, %v852_v27 }
 0x261   : > { %v767_v46 = vpop.permute.xlu1 %766  ;;  %v785_v40 = vpop.permute.xlu0 %784 }
 0x262   : > { %v871_v56 = vrot.slane %v767_v46, %v3152_v24 }
 0x265   : > { %v770_v13 = vpop.permute.xlu1 %769  ;;  %v794_v57 = vpop.permute.xlu0 %793 }
 0x266   : > { %v875_v36 = vrot.slane %v770_v13, %v3159_v28 }
 0x268   : > { %v876_v14 = vsel %vm446_vm1, %v875_v36, %v871_v56 }
 0x269   : > { %v761_v3 = vpop.permute.xlu1 %760  ;;  %v797_v12 = vpop.permute.xlu0 %796 }
 0x26a   : > { %v861_v33 = vrot.slane %v761_v3, %v3166_v31  ;;  %v918_v45 = vrot.slane %v797_v12, %v3166_v31 }
 0x26c   : > { %v862_v42 = vsel %vm453_vm2, %v861_v33, %v857_v44 }
 0x26d   : > { %v773_v55 = vpop.permute.xlu1 %772  ;;  %v806_v18 = vpop.permute.xlu0 %805 }
 0x26e   : > { %v880_v60 = vrot.slane %v773_v55, %v3166_v31 }
 0x270   : > { %v881_v13 = vsel %vm453_vm2, %v880_v60, %v876_v14 }
 0x271   : > { %v779_v41 = vpop.permute.xlu1 %778  ;;  %v809_v54 = vpop.permute.xlu0 %808 }
 0x275   : > { %v782_v59 = vpop.permute.xlu1 %781  ;;  %v818_v47 = vpop.permute.xlu0 %817 }
 0x276   : > { %v894_v14 = vrot.slane %v782_v59, %v3159_v28  ;;  %v932_v59 = vrot.slane %v806_v18, %v3159_v28 }
 0x279   : > { %v764_v38 = vpop.permute.xlu1 %763  ;;  %v821_v27 = vpop.permute.xlu0 %820 }
 0x27a   : > { %v866_v17 = vrot.slane %v764_v38, %v3175_v35 }
 0x27c   : > { %v867_v3 = vsel %vm460_vm3, %v866_v17, %v862_v42  ;;  %v890_v17 = vrot.slane %v779_v41, %v3152_v24  ;;  %v899_v42 = vrot.slane %v785_v40, %v3166_v31  ;;  %v951_v40 = vrot.slane %v818_v47, %v3159_v28 }
 0x27d   : > { %v776_v39 = vpop.permute.xlu1 %775  ;;  %v830_v56 = vpop.permute.xlu0 %829 }
 0x27e   : > { %v885_v37 = vrot.slane %v776_v39, %v3175_v35 }
 0x280   : > { %v886_v55 = vsel %vm460_vm3, %v885_v37, %v881_v13  ;;  %v913_v13 = vrot.slane %v794_v57, %v3159_v28 }
 0x281   : > { %v1001_v46 = vsel %vm595_vm4, %v886_v55, %v867_v3  ;;  %v791_v21 = vpop.permute.xlu1 %790  ;;  %v833_v44 = vpop.permute.xlu0 %832  ;;  %v895_v3 = vsel %vm446_vm1, %v894_v14, %v890_v17  ;;  %v970_v17 = vrot.slane %v830_v56, %v3159_v28 }
 0x282   : > { %v909_v60 = vrot.slane %v791_v21, %v3152_v24 }
 0x284   : > { %v914_v57 = vsel %vm446_vm1, %v913_v13, %v909_v60  ;;  %v975_v60 = vrot.slane %v833_v44, %v3166_v31 }
 0x285   : > { %v788_v38 = vpop.permute.xlu1 %787  ;;  %v842_v55 = vpop.permute.xlu0 %841  ;;  %v919_v56 = vsel %vm453_vm2, %v918_v45, %v914_v57 }
 0x286   : > { %v904_v7 = vrot.slane %v788_v38, %v3175_v35  ;;  %v956_v38 = vrot.slane %v821_v27, %v3166_v31 }
 0x289   : > { %v803_v19 = vpop.permute.xlu1 %802 }
 0x28a   : > { %v928_v37 = vrot.slane %v803_v19, %v3152_v24  ;;  %v937_v19 = vrot.slane %v809_v54, %v3166_v31 }
 0x28c   : > { %v933_v12 = vsel %vm446_vm1, %v932_v59, %v928_v37  ;;  %v989_v37 = vrot.slane %v842_v55, %v3159_v28 }
 0x28d   : > { %v800_v2 = vpop.permute.xlu1 %799 }
 0x28e   : > { %v923_v14 = vrot.slane %v800_v2, %v3175_v35 }
 0x290   : > { %v924_v27 = vsel %vm460_vm3, %v923_v14, %v919_v56 }
 0x291   : > { %v815_v36 = vpop.permute.xlu1 %814 }
 0x292   : > { %v947_v48 = vrot.slane %v815_v36, %v3152_v24  ;;  %v900_v36 = vsel %vm453_vm2, %v899_v42, %v895_v3 }
 0x293   : > { %v905_v2 = vsel %vm460_vm3, %v904_v7, %v900_v36 }
 0x294   : > { %v1002_v7 = vsel %vm597_vm5, %v905_v2, %v1001_v46 }
 0x295   : > { %v812_v39 = vpop.permute.xlu1 %811 }
 0x296   : > { %v942_v18 = vrot.slane %v812_v39, %v3175_v35  ;;  %v845_v39 = vpop.permute.xlu0 %844 }
 0x297   : > { %v994_v55 = vrot.slane %v845_v39, %v3166_v31 }
 0x299   : > { %v827_v61 = vpop.permute.xlu1 %826 }
 0x29a   : > { %v966_v41 = vrot.slane %v827_v61, %v3152_v24  ;;  %v952_v61 = vsel %vm446_vm1, %v951_v40, %v947_v48  ;;  %v938_v48 = vsel %vm453_vm2, %v937_v19, %v933_v12 }
 0x29b   : > { %v943_v3 = vsel %vm460_vm3, %v942_v18, %v938_v48  ;;  %v957_v44 = vsel %vm453_vm2, %v956_v38, %v952_v61 }
 0x29c   : > { %v971_v42 = vsel %vm446_vm1, %v970_v17, %v966_v41 }
 0x29d   : > { %v824_v33 = vpop.permute.xlu1 %823  ;;  %v976_v41 = vsel %vm453_vm2, %v975_v60, %v971_v42 }
 0x29e   : > { %v961_v54 = vrot.slane %v824_v33, %v3175_v35 }
 0x2a0   : > { %v962_v45 = vsel %vm460_vm3, %v961_v54, %v957_v44 }
 0x2a1   : > { %v839_v21 = vpop.permute.xlu1 %838 }
 0x2a2   : > { %v985_v47 = vrot.slane %v839_v21, %v3152_v24  ;;  %v1003_v21 = vsel %vm599_vm6, %v924_v27, %v1002_v7 }
 0x2a3   : > { %v1004_v57 = vsel %vm601_vm7, %v943_v3, %v1003_v21 }
 0x2a4   : > { %v990_v59 = vsel %vm446_vm1, %v989_v37, %v985_v47  ;;  %v1005_v46 = vsel %vm603_vm8, %v962_v45, %v1004_v57 }
 0x2a5   : > { %v836_v13 = vpop.permute.xlu1 %835  ;;  %v995_v17 = vsel %vm453_vm2, %v994_v55, %v990_v59 }
 0x2a6   : > { %v980_v33 = vrot.slane %v836_v13, %v3175_v35 }
 0x2a8   : > { %v981_v19 = vsel %vm460_vm3, %v980_v33, %v976_v41 }
 0x2a9   : > { %v848_v40 = vpop.permute.xlu1 %847  ;;  %v1006_v12 = vsel %vm605_vm9, %v981_v19, %v1005_v46 }
 0x2aa   : > { %v999_v14 = vrot.slane %v848_v40, %v3175_v35 }
 0x2ac   : > { %v1000_v36 = vsel %vm460_vm3, %v999_v14, %v995_v17 }
 0x2ad   : > { %v1007_v18 = vsel %vm607_vm10, %v1000_v36, %v1006_v12  ;;  %v3614_v61 = vpop.permute.xlu1 %1095 }
 0x2ae   : > { %v1009_v38 = vsel %vm610_vm11, %v1007_v18, 0.0 }
 0x2af   : > { %1010 = vadd.xlane.f32.xlu0 %v1009_v38 }
 0x2b1   : > { %v3616_v54 = vpop.permute.xlu1 %1099 }
 0x2b5   : > { %v3618_v47 = vpop.permute.xlu1 %1103 }
 0x2b9   : > { %v3620_v42 = vpop.permute.xlu1 %1107 }
 0x2bd   : > { %v3622_v13 = vpop.permute.xlu1 %1152 }
 0x2c1   : > { %v3626_v39 = vpop.permute.xlu1 %1156 }
 0x2c5   : > { %v3643_v55 = vpop.permute.xlu1 %1160 }
 0x2c9   : > { %v3660_v36 = vpop.permute.xlu1 %1164 }
 0x33c   : > { %v1011_v60 = vpop.xlane.xlu0 %1010 }
 0x33d   : > { %v1012_v2 = vmul.f32 0.03125, %v1011_v60 }
 0x33f   : > { %v1013_v56 = vadd.f32 1e-05, %v1012_v2 }
 0x341   : > { %2687 = vrsqrt.f32 %v1013_v56 }
 0x34b   : > { %v3624_v37 = vpop.eup %2687 }
 0x34c   : > { %v1019_v27 = vrot.slane %v3624_v37, %v3328_v4  ;;  %v3632_v48 = vrot.slane %v3624_v37, %v3331_v5  ;;  %v1023_v33 = vrot.slane %v3624_v37, %v3334_v8 }
 0x34e   : > { %v1056_v3 = vmul.f32 %v1019_v27, %v3353_v25  ;;  %v1057_v44 = vmul.f32 %v1019_v27, %v3350_v43  ;;  %v1064_v7 = vmul.f32 %v3632_v48, %v3425_v0  ;;  %v1060_v45 = vmul.f32 %v1023_v33, %v3368_v30 }
 0x34f   : > { %v1061_v21 = vmul.f32 %v1023_v33, %v3382_v50  ;;  %v1059_v19 = vmul.f32 %v1019_v27, %v3451_v15  ;;  %v1058_v30 = vmul.f32 %v1019_v27, %v3397_v63  ;;  %v1066_v57 = vmul.f32 %v3632_v48, %v3365_v52 }
 0x350   : > { %v1113_v59 = vmul.f32 %v3614_v61, %v1056_v3  ;;  %v1114_v41 = vmul.f32 %v3616_v54, %v1057_v44  ;;  %v1121_v43 = vmul.f32 %v3614_v61, %v1064_v7  ;;  %v1117_v0 = vmul.f32 %v3614_v61, %v1060_v45 }
 0x351   : > { %v1031_v50 = vrot.slane %v3624_v37, %v3339_v20  ;;  %v1118_v17 = vmul.f32 %v3616_v54, %v1061_v21  ;;  %v1116_v46 = vmul.f32 %v3620_v42, %v1059_v19  ;;  %v1115_v63 = vmul.f32 %v3618_v47, %v1058_v30 }
 0x352   : > { %v1170_v40 = vadd.f32 %v3622_v13, %v1113_v59  ;;  %v1171_v25 = vadd.f32 %v3626_v39, %v1114_v41  ;;  %v1178_v15 = vadd.f32 %v3622_v13, %v1121_v43  ;;  %v1174_v14 = vadd.f32 %v3622_v13, %v1117_v0 }
 0x353   : > { %v1123_v12 = vmul.f32 %v3618_v47, %v1066_v57  ;;  %v1175_v52 = vadd.f32 %v3626_v39, %v1118_v17  ;;  %v1173_v18 = vadd.f32 %v3660_v36, %v1116_v46  ;;  %v1062_v38 = vmul.f32 %v1023_v33, %v3411_v11 }
 0x354   : > { %1235 = vperm.xlu0 %2686, %v1170_v40   ;;  %1238 = vperm.xlu1 %2685, %v1171_v25   ;;  %v1069_v60 = vmul.f32 %v1031_v50, %v3379_v51  ;;  %v1172_v2 = vadd.f32 %v3643_v55, %v1115_v63  ;;  %v1035_v27 = vrot.slane %v3624_v37, %v3371_v34 }
 0x355   : > { %v1180_v56 = vadd.f32 %v3643_v55, %v1123_v12  ;;  %v1119_v3 = vmul.f32 %v3618_v47, %v1062_v38  ;;  %v1065_v7 = vmul.f32 %v3632_v48, %v3439_v10  ;;  %v1070_v11 = vmul.f32 %v1031_v50, %v3394_v58 }
 0x356   : > { %v1126_v44 = vmul.f32 %v3616_v54, %v1069_v60  ;;  %v1063_v51 = vmul.f32 %v1023_v33, %v3464_v23  ;;  %v1073_v45 = vmul.f32 %v1035_v27, %v3408_v62  ;;  %v1068_v58 = vmul.f32 %v1031_v50, %v3477_v26 }
 0x357   : > { %v1176_v59 = vadd.f32 %v3643_v55, %v1119_v3  ;;  %v1122_v21 = vmul.f32 %v3616_v54, %v1065_v7  ;;  %v1127_v19 = vmul.f32 %v3618_v47, %v1070_v11  ;;  %v1039_v40 = vrot.slane %v3624_v37, %v3400_v29 }
 0x358   : > { %1259 = vperm.xlu0 %2686, %v1178_v15   ;;  %1247 = vperm.xlu1 %2685, %v1174_v14   ;;  %v1183_v41 = vadd.f32 %v3626_v39, %v1126_v44  ;;  %v1120_v10 = vmul.f32 %v3620_v42, %v1063_v51  ;;  %v1130_v33 = vmul.f32 %v3616_v54, %v1073_v45  ;;  %v4883_v44 = vld [vmem:[#allocation16_spill] sm:$0xff] }
 0x359   : > { %v1179_v23 = vadd.f32 %v3626_v39, %v1122_v21  ;;  %v1184_v62 = vadd.f32 %v3643_v55, %v1127_v19  ;;  %v1074_v25 = vmul.f32 %v1035_v27, %v3421_v9  ;;  %v1125_v0 = vmul.f32 %v3614_v61, %v1068_v58  ;;  %v4885_v21 = vld [vmem:[#allocation17_spill] sm:$0xff] }
 0x35a   : > { %v1177_v43 = vadd.f32 %v3660_v36, %v1120_v10  ;;  %v1187_v30 = vadd.f32 %v3626_v39, %v1130_v33  ;;  %v1067_v57 = vmul.f32 %v3632_v48, %v3488_v49  ;;  %v1077_v15 = vmul.f32 %v1039_v40, %v3435_v53  ;;  %v4886_v58 = vld [vmem:[#allocation21_spill] sm:$0xff] }
 0x35b   : > { %v1131_v26 = vmul.f32 %v3618_v47, %v1074_v25  ;;  %v1182_v14 = vadd.f32 %v3622_v13, %v1125_v0  ;;  %v1072_v9 = vmul.f32 %v1035_v27, %v3499_v6  ;;  %v1043_v17 = vrot.slane %v3624_v37, %v3428_v32 }
 0x35c   : > { %1250 = vperm.xlu1 %2685, %v1175_v52   ;;  %1244 = vperm.xlu0 %2686, %v1173_v18   ;;  %v1124_v63 = vmul.f32 %v3620_v42, %v1067_v57  ;;  %v1134_v12 = vmul.f32 %v3616_v54, %v1077_v15  ;;  %v1078_v52 = vmul.f32 %v1039_v40, %v3448_v16 }
 0x35d   : > { %v1188_v46 = vadd.f32 %v3643_v55, %v1131_v26  ;;  %v1071_v53 = vmul.f32 %v1031_v50, %v3507_v22  ;;  %v1081_v49 = vmul.f32 %v1043_v17, %v3461_v1  ;;  %v1129_v18 = vmul.f32 %v3614_v61, %v1072_v9 }
 0x35e   : > { %v1181_v48 = vadd.f32 %v3660_v36, %v1124_v63  ;;  %v1191_v6 = vadd.f32 %v3626_v39, %v1134_v12  ;;  %v1135_v38 = vmul.f32 %v3618_v47, %v1078_v52  ;;  %v1082_v7 = vmul.f32 %v1043_v17, %v4883_v44  ;;  %v4889_v63 = vld [vmem:[#allocation23_spill] sm:$0xff]  ;;  %v4890_v52 = vld [vmem:[#allocation24_spill] sm:$0xff] }
 0x35f   : > { %v1128_v60 = vmul.f32 %v3620_v42, %v1071_v53  ;;  %v1186_v22 = vadd.f32 %v3622_v13, %v1129_v18  ;;  %v1138_v50 = vmul.f32 %v3616_v54, %v1081_v49  ;;  %v1083_v53 = vmul.f32 %v1043_v17, %v4890_v52 }
 0x360   : > { %1241 = vperm.xlu1 %2685, %v1172_v2   ;;  %1265 = vperm.xlu0 %2686, %v1180_v56   ;;  %v4881_v2 = vld [vmem:[#allocation19_spill] sm:$0xff]  ;;  %v1192_v1 = vadd.f32 %v3643_v55, %v1135_v38 }
 0x361   : > { %v1076_v16 = vmul.f32 %v1039_v40, %v4881_v2  ;;  %v4882_v56 = vld [vmem:[#allocation15_spill] sm:$0xff]  ;;  %v1185_v11 = vadd.f32 %v3660_v36, %v1128_v60  ;;  %v1195_v45 = vadd.f32 %v3626_v39, %v1138_v50  ;;  %v1140_v49 = vmul.f32 %v3620_v42, %v1083_v53 }
 0x362   : > { %v1047_v3 = vrot.slane %v3624_v37, %v4882_v56  ;;  %v2857_v60 = vmov 0.0  }
 0x363   : > { %v1133_v51 = vmul.f32 %v3614_v61, %v1076_v16  ;;  %2608 = vmatprep.subr.mxu0 %v2857_v60  ;;  %2610 = vmatprep.mubr.msk.f32.mxu0 %vm2858_vm12, %v2857_v60 }
 0x364   : > { %1253 = vperm.xlu1 %2685, %v1176_v59   ;;  %1274 = vperm.xlu0 %2686, %v1183_v41   ;;  %v1139_v59 = vmul.f32 %v3618_v47, %v1082_v7  ;;  %v4884_v41 = vld [vmem:[#allocation20_spill] sm:$0xff]  ;;  %v1085_v19 = vmul.f32 %v1047_v3, %v4885_v21  ;;  %v1084_v12 = vmul.f32 %v1047_v3, %v4889_v63 }
 0x365   : > { %v1075_v37 = vmul.f32 %v1035_v27, %v4884_v41  ;;  %v1190_v10 = vadd.f32 %v3622_v13, %v1133_v51 }
 0x366   : > { %v1142_v25 = vmul.f32 %v3616_v54, %v1085_v19 }
 0x367   : > { %v1132_v33 = vmul.f32 %v3620_v42, %v1075_v37 }
 0x368   : > { %1262 = vperm.xlu1 %2685, %v1179_v23   ;;  %1277 = vperm.xlu0 %2686, %v1184_v62   ;;  %v1080_v23 = vmul.f32 %v1043_v17, %v4886_v58  ;;  %v1196_v62 = vadd.f32 %v3643_v55, %v1139_v59  ;;  %v1199_v57 = vadd.f32 %v3626_v39, %v1142_v25 }
 0x369   : > { %v1189_v26 = vadd.f32 %v3660_v36, %v1132_v33  ;;  %v1141_v39 = vmul.f32 %v3614_v61, %v1084_v12 }
 0x36a   : > { %v1137_v15 = vmul.f32 %v3614_v61, %v1080_v23 }
 0x36c   : > { %1256 = vperm.xlu1 %2685, %v1177_v43   ;;  %1286 = vperm.xlu0 %2686, %v1187_v30   ;;  %v4887_v43 = vld [vmem:[#allocation18_spill] sm:$0xff]  ;;  %v1194_v9 = vadd.f32 %v3622_v13, %v1137_v15 }
 0x36d   : > { %v1086_v0 = vmul.f32 %v1047_v3, %v4887_v43  ;;  %v4888_v30 = vld [vmem:[#allocation22_spill] sm:$0xff] }
 0x36e   : > { %v1079_v27 = vmul.f32 %v1039_v40, %v4888_v30 }
 0x370   : > { %1271 = vperm.xlu1 %2685, %v1182_v14   ;;  %1289 = vperm.xlu0 %2686, %v1188_v46   ;;  %v1143_v14 = vmul.f32 %v3618_v47, %v1086_v0  ;;  %v1136_v46 = vmul.f32 %v3620_v42, %v1079_v27  ;;  %v1198_v47 = vadd.f32 %v3622_v13, %v1141_v39 }
 0x372   : > { %v1200_v54 = vadd.f32 %v3643_v55, %v1143_v14  ;;  %v1193_v40 = vadd.f32 %v3660_v36, %v1136_v46  ;;  %v1197_v55 = vadd.f32 %v3660_v36, %v1140_v49 }
 0x374   : > { %1268 = vperm.xlu1 %2685, %v1181_v48   ;;  %1298 = vperm.xlu0 %2686, %v1191_v6   ;;  %v4891_v48 = vld [vmem:[#allocation25_spill] sm:$0xff] }
 0x375   : > { %v1087_v6 = vmul.f32 %v1047_v3, %v4891_v48 }
 0x377   : > { %v1144_v18 = vmul.f32 %v3620_v42, %v1087_v6 }
 0x378   : > { %1283 = vperm.xlu1 %2685, %v1186_v22   ;;  %1301 = vperm.xlu0 %2686, %v1192_v1  }
 0x379   : > { %v1201_v38 = vadd.f32 %v3660_v36, %v1144_v18 }
 0x37c   : > { %1280 = vperm.xlu1 %2685, %v1185_v11   ;;  %1310 = vperm.xlu0 %2686, %v1195_v45  }
 0x380   : > { %1295 = vperm.xlu1 %2685, %v1190_v10   ;;  %1313 = vperm.xlu0 %2686, %v1196_v62  }
 0x384   : > { %1292 = vperm.xlu1 %2685, %v1189_v26   ;;  %1322 = vperm.xlu0 %2686, %v1199_v57  }
 0x388   : > { %1307 = vperm.xlu1 %2685, %v1194_v9   ;;  %1325 = vperm.xlu0 %2686, %v1200_v54  }
 0x38c   : > { %1304 = vperm.xlu1 %2685, %v1193_v40  }
 0x390   : > { %1319 = vperm.xlu1 %2685, %v1198_v47  }
 0x394   : > { %1316 = vperm.xlu1 %2685, %v1197_v55  }
 0x398   : > { %1328 = vperm.xlu1 %2685, %v1201_v38  }
 0x3d3   : > { %v1236_v61 = vpop.permute.xlu0 %1235  ;;  %v1239_v17 = vpop.permute.xlu1 %1238 }
 0x3d4   : > { %v1333_v62 = vrot.slane %v1236_v61, %v3152_v24  ;;  %v1337_v33 = vrot.slane %v1239_v17, %v3159_v28 }
 0x3d6   : > { %v1338_v26 = vsel %vm446_vm1, %v1337_v33, %v1333_v62 }
 0x3d7   : > { %v1260_v13 = vpop.permute.xlu0 %1259  ;;  %v1248_v2 = vpop.permute.xlu1 %1247 }
 0x3d8   : > { %v1352_v57 = vrot.slane %v1248_v2, %v3152_v24  ;;  %v1371_v14 = vrot.slane %v1260_v13, %v3152_v24 }
 0x3db   : > { %v1245_v16 = vpop.permute.xlu0 %1244  ;;  %v1251_v22 = vpop.permute.xlu1 %1250 }
 0x3dc   : > { %v1356_v0 = vrot.slane %v1251_v22, %v3159_v28  ;;  %v1347_v63 = vrot.slane %v1245_v16, %v3175_v35 }
 0x3de   : > { %v1357_v12 = vsel %vm446_vm1, %v1356_v0, %v1352_v57 }
 0x3df   : > { %v1266_v3 = vpop.permute.xlu0 %1265  ;;  %v1242_v1 = vpop.permute.xlu1 %1241 }
 0x3e0   : > { %v1342_v25 = vrot.slane %v1242_v1, %v3166_v31  ;;  %v1380_v39 = vrot.slane %v1266_v3, %v3166_v31 }
 0x3e2   : > { %v1343_v9 = vsel %vm453_vm2, %v1342_v25, %v1338_v26 }
 0x3e3   : > { %v1275_v50 = vpop.permute.xlu0 %1274  ;;  %v1254_v44 = vpop.permute.xlu1 %1253  ;;  %v1348_v49 = vsel %vm460_vm3, %v1347_v63, %v1343_v9 }
 0x3e4   : > { %v1361_v15 = vrot.slane %v1254_v44, %v3166_v31  ;;  %v1394_v52 = vrot.slane %v1275_v50, %v3159_v28 }
 0x3e6   : > { %v1362_v48 = vsel %vm453_vm2, %v1361_v15, %v1357_v12 }
 0x3e7   : > { %v1278_v7 = vpop.permute.xlu0 %1277  ;;  %v1263_v42 = vpop.permute.xlu1 %1262 }
 0x3e8   : > { %v1375_v27 = vrot.slane %v1263_v42, %v3159_v28  ;;  %v1399_v38 = vrot.slane %v1278_v7, %v3166_v31 }
 0x3ea   : > { %v1376_v53 = vsel %vm446_vm1, %v1375_v27, %v1371_v14 }
 0x3eb   : > { %v1287_v11 = vpop.permute.xlu0 %1286  ;;  %v1257_v51 = vpop.permute.xlu1 %1256  ;;  %v1381_v16 = vsel %vm453_vm2, %v1380_v39, %v1376_v53  ;;  %v4892_v53 = vld [vmem:[#allocation13_spill] sm:$0xff] }
 0x3ec   : > { %v1366_v47 = vrot.slane %v1257_v51, %v3175_v35  ;;  %v1413_v6 = vrot.slane %v1287_v11, %v3159_v28 }
 0x3ee   : > { %v1367_v1 = vsel %vm460_vm3, %v1366_v47, %v1362_v48  ;;  %v4893_v47 = vld [vmem:[#allocation14_spill] sm:$0xff] }
 0x3ef   : > { %v1272_v36 = vpop.permute.xlu1 %1271  ;;  %v1290_v45 = vpop.permute.xlu0 %1289  ;;  %vm1564_vm13 = vcmp.eq.s32.totalorder %v4893_v47, %v4892_v53 }
 0x3f0   : > { %v1390_v54 = vrot.slane %v1272_v36, %v3152_v24  ;;  %v1418_v50 = vrot.slane %v1290_v45, %v3166_v31 }
 0x3f2   : > { %v1395_v60 = vsel %vm446_vm1, %v1394_v52, %v1390_v54 }
 0x3f3   : > { %v1269_v59 = vpop.permute.xlu1 %1268  ;;  %v1299_v41 = vpop.permute.xlu0 %1298  ;;  %v1400_v42 = vsel %vm453_vm2, %v1399_v38, %v1395_v60 }
 0x3f4   : > { %v1385_v61 = vrot.slane %v1269_v59, %v3175_v35  ;;  %v1432_v2 = vrot.slane %v1299_v41, %v3159_v28 }
 0x3f6   : > { %v1386_v59 = vsel %vm460_vm3, %v1385_v61, %v1381_v16  ;;  %v1589_v16 = vld [vmem:[#allocation7] ss:$8 sm:$0xf] }
 0x3f7   : > { %v1284_v37 = vpop.permute.xlu1 %1283  ;;  %v1302_v19 = vpop.permute.xlu0 %1301 }
 0x3f8   : > { %v1409_v40 = vrot.slane %v1284_v37, %v3152_v24  ;;  %v1437_v41 = vrot.slane %v1302_v19, %v3166_v31 }
 0x3fa   : > { %v1414_v22 = vsel %vm446_vm1, %v1413_v6, %v1409_v40 }
 0x3fb   : > { %v1281_v21 = vpop.permute.xlu1 %1280  ;;  %v1311_v58 = vpop.permute.xlu0 %1310  ;;  %v1419_v37 = vsel %vm453_vm2, %v1418_v50, %v1414_v22  ;;  %v1590_v22 = vld [vmem:[#allocation7] ss:$8 sm:$0xf0] }
 0x3fc   : > { %v1404_v3 = vrot.slane %v1281_v21, %v3175_v35  ;;  %v1451_v44 = vrot.slane %v1311_v58, %v3159_v28  ;;  %v3821_v50 = vor.u32 %v1590_v22, %v1589_v16  ;;  %v2247_v16 = vld [vmem:[#allocation7 + $0x46] ss:$8 sm:$0xf] }
 0x3ff   : > { %v1296_v10 = vpop.permute.xlu1 %1295  ;;  %v1314_v30 = vpop.permute.xlu0 %1313 }
 0x400   : > { %v1428_v55 = vrot.slane %v1296_v10, %v3152_v24  ;;  %v1405_v10 = vsel %vm460_vm3, %v1404_v3, %v1400_v42  ;;  %v1456_v58 = vrot.slane %v1314_v30, %v3166_v31  ;;  %v1593_v3 = vld [vmem:[#allocation7 + $0x40] ss:$8 sm:$0xf] }
 0x402   : > { %v1433_v11 = vsel %vm446_vm1, %v1432_v2, %v1428_v55 }
 0x403   : > { %v1293_v23 = vpop.permute.xlu1 %1292  ;;  %v1323_v18 = vpop.permute.xlu0 %1322  ;;  %v1438_v19 = vsel %vm453_vm2, %v1437_v41, %v1433_v11  ;;  %v1702_v11 = vld [vmem:[#allocation7 + $0x41] ss:$8 sm:$0xf]  ;;  %v1603_v41 = vrot.slane %v3821_v50, %v3328_v4 }
 0x404   : > { %v1423_v7 = vrot.slane %v1293_v23, %v3175_v35  ;;  %v1470_v23 = vrot.slane %v1323_v18, %v3159_v28 }
 0x406   : > { %v1424_v25 = vsel %vm460_vm3, %v1423_v7, %v1419_v37  ;;  %v1699_v7 = vld [vmem:[#allocation7 + $0x1] ss:$8 sm:$0xf0]  ;;  %v1607_v37 = vrot.slane %v3821_v50, %v3334_v8 }
 0x407   : > { %v1308_v43 = vpop.permute.xlu1 %1307  ;;  %v1326_v62 = vpop.permute.xlu0 %1325 }
 0x408   : > { %v1447_v17 = vrot.slane %v1308_v43, %v3152_v24  ;;  %v1475_v28 = vrot.slane %v1326_v62, %v3166_v31  ;;  %v1623_v62 = vrot.slane %v3821_v50, %v3400_v29 }
 0x40a   : > { %v1452_v45 = vsel %vm446_vm1, %v1451_v44, %v1447_v17  ;;  %v1698_v44 = vld [vmem:[#allocation7 + $0x1] ss:$8 sm:$0xf] }
 0x40b   : > { %v1305_v46 = vpop.permute.xlu1 %1304  ;;  %v1457_v26 = vsel %vm453_vm2, %v1456_v58, %v1452_v45  ;;  %v1611_v45 = vrot.slane %v3821_v50, %v3331_v5  ;;  %v1812_v58 = vld [vmem:[#allocation7 + $0x42] ss:$8 sm:$0xf0] }
 0x40c   : > { %v1442_v51 = vrot.slane %v1305_v46, %v3175_v35 }
 0x40e   : > { %v1443_v0 = vsel %vm460_vm3, %v1442_v51, %v1438_v19  ;;  %v1703_v51 = vld [vmem:[#allocation7 + $0x41] ss:$8 sm:$0xf0]  ;;  %v1917_v19 = vld [vmem:[#allocation7 + $0x3] ss:$8 sm:$0xf0] }
 0x40f   : > { %v1320_v13 = vpop.permute.xlu1 %1319 }
 0x410   : > { %v1466_v36 = vrot.slane %v1320_v13, %v3152_v24  ;;  %v1482_v24 = vsel %vm595_vm4, %v1367_v1, %v1348_v49  ;;  %v1594_v1 = vld [vmem:[#allocation7 + $0x40] ss:$8 sm:$0xf0] }
 0x411   : > { %v1483_v43 = vsel %vm597_vm5, %v1386_v59, %v1482_v24  ;;  %v3823_v42 = vor.u32 %v1594_v1, %v1593_v3  ;;  %v1808_v59 = vld [vmem:[#allocation7 + $0x2] ss:$8 sm:$0xf0]  ;;  %v3839_v24 = vor.u32 %v1699_v7, %v1698_v44  ;;  %v2134_v7 = vld [vmem:[#allocation7 + $0x5] ss:$8 sm:$0xf] }
 0x412   : > { %v1471_v27 = vsel %vm446_vm1, %v1470_v23, %v1466_v36  ;;  %v1484_v30 = vsel %vm599_vm6, %v1405_v10, %v1483_v43  ;;  %v1807_v36 = vld [vmem:[#allocation7 + $0x2] ss:$8 sm:$0xf]  ;;  %v1619_v23 = vrot.slane %v3821_v50, %v3371_v34  ;;  %v1631_v43 = vrot.slane %v3821_v50, %v4882_v56  ;;  %v2135_v44 = vld [vmem:[#allocation7 + $0x5] ss:$8 sm:$0xf0] }
 0x413   : > { %v1317_v21 = vpop.permute.xlu1 %1316  ;;  %v1485_v14 = vsel %vm601_vm7, %v1424_v25, %v1484_v30  ;;  %v1476_v54 = vsel %vm453_vm2, %v1475_v28, %v1471_v27  ;;  %v1811_v10 = vld [vmem:[#allocation7 + $0x42] ss:$8 sm:$0xf]  ;;  %v1916_v25 = vld [vmem:[#allocation7 + $0x3] ss:$8 sm:$0xf]  ;;  %v1639_v27 = vrot.slane %v3823_v42, %v3334_v8  ;;  %v1724_v47 = vrot.slane %v3839_v24, %v3339_v20 }
 0x414   : > { %v1461_v33 = vrot.slane %v1317_v21, %v3175_v35  ;;  %v1486_v46 = vsel %vm603_vm8, %v1443_v0, %v1485_v14  ;;  %v1615_v21 = vrot.slane %v3821_v50, %v3339_v20  ;;  %v1635_v0 = vrot.slane %v3823_v42, %v3328_v4  ;;  %v1920_v30 = vld [vmem:[#allocation7 + $0x43] ss:$8 sm:$0xf]  ;;  %v2139_v1 = vld [vmem:[#allocation7 + $0x45] ss:$8 sm:$0xf0] }
 0x415   : > { %v1921_v28 = vld [vmem:[#allocation7 + $0x43] ss:$8 sm:$0xf0]  ;;  %v1655_v14 = vrot.slane %v3823_v42, %v3400_v29  ;;  %v2243_v3 = vld [vmem:[#allocation7 + $0x6] ss:$8 sm:$0xf] }
 0x416   : > { %v1462_v57 = vsel %vm460_vm3, %v1461_v33, %v1457_v26  ;;  %v1627_v33 = vrot.slane %v3821_v50, %v3428_v32  ;;  %v1643_v26 = vrot.slane %v3823_v42, %v3331_v5 }
 0x417   : > { %v1329_v15 = vpop.permute.xlu1 %1328  ;;  %v1487_v12 = vsel %vm605_vm9, %v1462_v57, %v1486_v46  ;;  %v1647_v57 = vrot.slane %v3823_v42, %v3339_v20  ;;  %v1663_v46 = vrot.slane %v3823_v42, %v4882_v56 }
 0x418   : > { %v1480_v9 = vrot.slane %v1329_v15, %v3175_v35  ;;  %v1651_v15 = vrot.slane %v3823_v42, %v3371_v34 }
 0x41a   : > { %v1481_v63 = vsel %vm460_vm3, %v1480_v9, %v1476_v54  ;;  %v3855_v9 = vor.u32 %v1703_v51, %v1702_v11  ;;  %v1659_v54 = vrot.slane %v3823_v42, %v3428_v32  ;;  %v2029_v51 = vld [vmem:[#allocation7 + $0x44] ss:$8 sm:$0xf] }
 0x41b   : > { %v1488_v40 = vsel %vm607_vm10, %v1481_v63, %v1487_v12  ;;  %v3861_v63 = vor.u32 %v1808_v59, %v1807_v36  ;;  %v3863_v12 = vor.u32 %v1812_v58, %v1811_v10  ;;  %v2025_v58 = vld [vmem:[#allocation7 + $0x4] ss:$8 sm:$0xf]  ;;  %v2244_v36 = vld [vmem:[#allocation7 + $0x6] ss:$8 sm:$0xf0] }
 0x41c   : > { %2609 = vmatpush3.xpose.msk.msra.mxu0 %vm610_vm11, %v1488_v40  ;;  %v2030_v11 = vld [vmem:[#allocation7 + $0x44] ss:$8 sm:$0xf0]  ;;  %v2352_v59 = vld [vmem:[#allocation7 + $0x7] ss:$8 sm:$0xf] }
 0x41d   : > { %v3967_v22 = vor.u32 %v2030_v11, %v2029_v51 }
 0x41f   : > { %2611 = vmatmul.mubr.msk.f32.vlgmr.msra.gmra.mrb[0].mxu0 %vm610_vm11, %v1488_v40  ;;  %v1712_v40 = vrot.slane %v3839_v24, %v3328_v4 }
 0x4f2   : > { %v1557_v31 = vpop.f32.mrb[0].mxu0 }
 0x4f3   : > { %v1561_v39 = vmul.f32 0.17677669, %v1557_v31  ;;  %v2612_v52 = vpop.f32.mrb[1].mxu0  ;;  %v1716_v31 = vrot.slane %v3839_v24, %v3334_v8 }
 0x4f4   : > { %v3871_v52 = vor.u32 %v1921_v28, %v1920_v30  ;;  %v2138_v28 = vld [vmem:[#allocation7 + $0x45] ss:$8 sm:$0xf]  ;;  %v2248_v30 = vld [vmem:[#allocation7 + $0x46] ss:$8 sm:$0xf0] }
 0x4f5   : > { %v2598_v35 = vadd.f32 -100.0, %v1561_v39 }
 0x4f6   : > { %v1990_v10 = vrot.slane %v3871_v52, %v4882_v56 }
 0x4f7   : > { %v1566_v49 = vsel %vm1564_vm13, %v2598_v35, %v1561_v39  ;;  %v3869_v39 = vor.u32 %v1917_v19, %v1916_v25  ;;  %v1728_v35 = vrot.slane %v3839_v24, %v3371_v34  ;;  %v2026_v25 = vld [vmem:[#allocation7 + $0x4] ss:$8 sm:$0xf0]  ;;  %v3969_v19 = vor.u32 %v2135_v44, %v2134_v7 }
 0x4f8   : > { %v1568_v48 = vsel %vm1567_vm14, %v1566_v49, -inf }
 0x4f9   : > { %1569 = vmax.xlane.f32.xlu0 %v1568_v48 }
 0x586   : > { %v1570_v6 = vpop.xlane.xlu0 %1569 }
 0x587   : > { %vm1571_vm15 = vcmp.eq.f32.partialorder %v1566_v49, %v1570_v6  ;;  %v1732_v49 = vrot.slane %v3839_v24, %v3400_v29 }
 0x588   : > { %v1572_v55 = vsel %vm1571_vm15, %v4892_v53, 8  ;;  %v1720_v53 = vrot.slane %v3839_v24, %v3331_v5 }
 0x589   : > { %v1573_v18 = vsel %vm1567_vm14, %v1572_v55, 2147483647  ;;  %v3971_v55 = vor.u32 %v2139_v1, %v2138_v28 }
 0x58a   : > { %v1575_v38 = vshra.s32 %v1573_v18, 16  ;;  %v1574_v61 = vand.u32 65535, %v1573_v18  ;;  %v2357_v18 = vld [vmem:[#allocation7 + $0x47] ss:$8 sm:$0xf0] }
 0x58c   : > { %v1577_v60 = vcvt.s32.f32 %v1575_v38  ;;  %v1576_v13 = vcvt.s32.f32 %v1574_v61  ;;  %v3951_v61 = vor.u32 %v2026_v25, %v2025_v58  ;;  %v3973_v38 = vor.u32 %v2244_v36, %v2243_v3 }
 0x58e   : > { %1578 = vmin.xlane.f32.xlu1 %v1577_v60  ;;  %v2039_v6 = vrot.slane %v3951_v61, %v3328_v4  ;;  %v2043_v58 = vrot.slane %v3951_v61, %v3334_v8  ;;  %v2047_v44 = vrot.slane %v3951_v61, %v3331_v5  ;;  %v2051_v1 = vrot.slane %v3951_v61, %v3339_v20 }
 0x58f   : > { %v2059_v3 = vrot.slane %v3951_v61, %v3400_v29  ;;  %v2063_v7 = vrot.slane %v3951_v61, %v3428_v32 }
 0x61b   : > { %v3818_v17 = vpop.xlane.xlu1 %1578 }
 0x61c   : > { %vm1580_vm0 = vcmp.eq.f32.partialorder %v1577_v60, %v3818_v17  ;;  %v2353_v60 = vld [vmem:[#allocation7 + $0x7] ss:$8 sm:$0xf0] }
 0x61d   : > { %v1581_v2 = vsel %vm1580_vm0, %v1576_v13, inf  ;;  %v2356_v13 = vld [vmem:[#allocation7 + $0x47] ss:$8 sm:$0xf]  ;;  %v3981_v25 = vor.u32 %v2353_v60, %v2352_v59  ;;  %v1585_v59 = vcvt.f32.s32 %v3818_v17 }
 0x61e   : > { %1582 = vmin.xlane.f32.xlu0 %v1581_v2  ;;  %v3975_v2 = vor.u32 %v2248_v30, %v2247_v16  ;;  %v3983_v48 = vor.u32 %v2357_v18, %v2356_v13  ;;  %v2055_v16 = vrot.slane %v3951_v61, %v3371_v34 }
 0x61f   : > { %v1586_v28 = vshll.u32 %v1585_v59, 16  ;;  %v2378_v51 = vrot.slane %v3981_v25, %v3339_v20 }
 0x620   : > { %v2406_v36 = vrot.slane %v3983_v48, %v3331_v5  ;;  %v2410_v17 = vrot.slane %v3983_v48, %v3339_v20  ;;  %v2414_v30 = vrot.slane %v3983_v48, %v3371_v34  ;;  %v2418_v59 = vrot.slane %v3983_v48, %v3400_v29 }
 0x6ab   : > { %v1583_v18 = vpop.xlane.xlu0 %1582 }
 0x6ac   : > { %v1584_v60 = vcvt.f32.s32 %v1583_v18 }
 0x6ae   : > { %v4098_v11 = vadd.s32 %v1586_v28, %v1584_v60 }
 0x6b0   : > { %vm1588_vm1 = vcmp.eq.s32.totalorder %v4098_v11, 0  ;;  %vm1696_vm2 = vcmp.eq.s32.totalorder %v4098_v11, 1  ;;  %vm1805_vm3 = vcmp.eq.s32.totalorder %v4098_v11, 2  ;;  %vm1914_vm4 = vcmp.eq.s32.totalorder %v4098_v11, 3 }
 0x6b1   : > { %v1680_v60 = vsel %vm1588_vm1, %v1603_v41, 0.0  ;;  %v1681_v28 = vsel %vm1588_vm1, %v1607_v37, 0.0  ;;  %v1682_v18 = vsel %vm1588_vm1, %v1611_v45, 0.0  ;;  %v1683_v41 = vsel %vm1588_vm1, %v1615_v21, 0.0 }
 0x6b2   : > { %v1684_v37 = vsel %vm1588_vm1, %v1619_v23, 0.0  ;;  %v1685_v45 = vsel %vm1588_vm1, %v1623_v62, 0.0  ;;  %v1686_v13 = vsel %vm1588_vm1, %v1627_v33, 0.0  ;;  %v1687_v21 = vsel %vm1588_vm1, %v1631_v43, 0.0 }
 0x6b3   : > { %v1688_v23 = vsel %vm1588_vm1, %v1635_v0, 0.0  ;;  %v1689_v62 = vsel %vm1588_vm1, %v1639_v27, 0.0  ;;  %v1690_v50 = vsel %vm1588_vm1, %v1643_v26, 0.0  ;;  %v1691_v33 = vsel %vm1588_vm1, %v1647_v57, 0.0 }
 0x6b4   : > { %v1692_v43 = vsel %vm1588_vm1, %v1651_v15, 0.0  ;;  %v1693_v0 = vsel %vm1588_vm1, %v1655_v14, 0.0  ;;  %v1694_v27 = vsel %vm1588_vm1, %v1659_v54, 0.0  ;;  %v1695_v26 = vsel %vm1588_vm1, %v1663_v46, 0.0 }
 0x6b5   : > { %v1789_v57 = vsel %vm1696_vm2, %v1712_v40, %v1680_v60  ;;  %v1790_v15 = vsel %vm1696_vm2, %v1716_v31, %v1681_v28  ;;  %v1791_v42 = vsel %vm1696_vm2, %v1720_v53, %v1682_v18  ;;  %v1792_v14 = vsel %vm1696_vm2, %v1724_v47, %v1683_v41 }
 0x6b6   : > { %v1793_v54 = vsel %vm1696_vm2, %v1728_v35, %v1684_v37  ;;  %v1794_v46 = vsel %vm1696_vm2, %v1732_v49, %v1685_v45  ;;  %v4894_v40 = vrot.slane %v3839_v24, %v3428_v32  ;;  %v4895_v53 = vrot.slane %v3839_v24, %v4882_v56 }
 0x6b7   : > { %v4896_v35 = vrot.slane %v3855_v9, %v3328_v4  ;;  %v4897_v49 = vrot.slane %v3855_v9, %v3334_v8  ;;  %v4899_v28 = vrot.slane %v3855_v9, %v3339_v20  ;;  %v4900_v37 = vrot.slane %v3855_v9, %v3371_v34 }
 0x6b8   : > { %v1795_v31 = vsel %vm1696_vm2, %v4894_v40, %v1686_v13  ;;  %v1796_v47 = vsel %vm1696_vm2, %v4895_v53, %v1687_v21  ;;  %v4898_v13 = vrot.slane %v3855_v9, %v3331_v5  ;;  %v4901_v21 = vrot.slane %v3855_v9, %v3400_v29 }
 0x6b9   : > { %v1797_v18 = vsel %vm1696_vm2, %v4896_v35, %v1688_v23  ;;  %v1798_v60 = vsel %vm1696_vm2, %v4897_v49, %v1689_v62  ;;  %v1800_v41 = vsel %vm1696_vm2, %v4899_v28, %v1691_v33  ;;  %v1801_v45 = vsel %vm1696_vm2, %v4900_v37, %v1692_v43 }
 0x6ba   : > { %v1799_v24 = vsel %vm1696_vm2, %v4898_v13, %v1690_v50  ;;  %v1802_v23 = vsel %vm1696_vm2, %v4901_v21, %v1693_v0  ;;  %v4902_v62 = vrot.slane %v3855_v9, %v3428_v32  ;;  %v4903_v33 = vrot.slane %v3855_v9, %v4882_v56 }
 0x6bb   : > { %v4904_v43 = vrot.slane %v3861_v63, %v3328_v4  ;;  %v4905_v0 = vrot.slane %v3861_v63, %v3334_v8  ;;  %vm2023_vm5 = vcmp.eq.s32.totalorder %v4098_v11, 4  ;;  %vm2132_vm6 = vcmp.eq.s32.totalorder %v4098_v11, 5 }
 0x6bc   : > { %v1803_v50 = vsel %vm1696_vm2, %v4902_v62, %v1694_v27  ;;  %v1804_v40 = vsel %vm1696_vm2, %v4903_v33, %v1695_v26  ;;  %v4906_v27 = vrot.slane %v3861_v63, %v3331_v5  ;;  %v4907_v26 = vrot.slane %v3861_v63, %v3339_v20 }
 0x6bd   : > { %v1898_v53 = vsel %vm1805_vm3, %v4904_v43, %v1789_v57  ;;  %v1899_v35 = vsel %vm1805_vm3, %v4905_v0, %v1790_v15  ;;  %v4908_v57 = vrot.slane %v3861_v63, %v3371_v34  ;;  %v4909_v15 = vrot.slane %v3861_v63, %v3400_v29 }
 0x6be   : > { %v1900_v9 = vsel %vm1805_vm3, %v4906_v27, %v1791_v42  ;;  %v1901_v49 = vsel %vm1805_vm3, %v4907_v26, %v1792_v14  ;;  %v4910_v42 = vrot.slane %v3861_v63, %v3428_v32  ;;  %v4911_v14 = vrot.slane %v3861_v63, %v4882_v56 }
 0x6bf   : > { %v1902_v13 = vsel %vm1805_vm3, %v4908_v57, %v1793_v54  ;;  %v1903_v28 = vsel %vm1805_vm3, %v4909_v15, %v1794_v46  ;;  %v4912_v54 = vrot.slane %v3863_v12, %v3328_v4  ;;  %v4913_v46 = vrot.slane %v3863_v12, %v3334_v8 }
 0x6c0   : > { %v1904_v37 = vsel %vm1805_vm3, %v4910_v42, %v1795_v31  ;;  %v1905_v21 = vsel %vm1805_vm3, %v4911_v14, %v1796_v47  ;;  %v4914_v31 = vrot.slane %v3863_v12, %v3331_v5  ;;  %v4915_v47 = vrot.slane %v3863_v12, %v3339_v20 }
 0x6c1   : > { %v1906_v62 = vsel %vm1805_vm3, %v4912_v54, %v1797_v18  ;;  %v1907_v33 = vsel %vm1805_vm3, %v4913_v46, %v1798_v60  ;;  %v4916_v18 = vrot.slane %v3863_v12, %v3371_v34  ;;  %v4917_v60 = vrot.slane %v3863_v12, %v3400_v29 }
 0x6c2   : > { %v1908_v63 = vsel %vm1805_vm3, %v4914_v31, %v1799_v24  ;;  %v1909_v43 = vsel %vm1805_vm3, %v4915_v47, %v1800_v41  ;;  %v4918_v24 = vrot.slane %v3863_v12, %v3428_v32  ;;  %v4919_v41 = vrot.slane %v3863_v12, %v4882_v56 }
 0x6c3   : > { %v1910_v0 = vsel %vm1805_vm3, %v4916_v18, %v1801_v45  ;;  %v1911_v27 = vsel %vm1805_vm3, %v4917_v60, %v1802_v23  ;;  %v4920_v45 = vrot.slane %v3869_v39, %v3328_v4  ;;  %v4921_v23 = vrot.slane %v3869_v39, %v3334_v8 }
 0x6c4   : > { %v1912_v26 = vsel %vm1805_vm3, %v4918_v24, %v1803_v50  ;;  %v1913_v57 = vsel %vm1805_vm3, %v4919_v41, %v1804_v40  ;;  %v4922_v50 = vrot.slane %v3869_v39, %v3331_v5  ;;  %v4923_v40 = vrot.slane %v3869_v39, %v3339_v20 }
 0x6c5   : > { %v2007_v15 = vsel %vm1914_vm4, %v4920_v45, %v1898_v53  ;;  %v2008_v42 = vsel %vm1914_vm4, %v4921_v23, %v1899_v35  ;;  %v4924_v53 = vrot.slane %v3869_v39, %v3371_v34  ;;  %v4925_v35 = vrot.slane %v3869_v39, %v3400_v29 }
 0x6c6   : > { %v2009_v12 = vsel %vm1914_vm4, %v4922_v50, %v1900_v9  ;;  %v2010_v14 = vsel %vm1914_vm4, %v4923_v40, %v1901_v49  ;;  %v4926_v9 = vrot.slane %v3869_v39, %v3428_v32  ;;  %v4927_v49 = vrot.slane %v3869_v39, %v4882_v56 }
 0x6c7   : > { %v2011_v54 = vsel %vm1914_vm4, %v4924_v53, %v1902_v13  ;;  %v2012_v46 = vsel %vm1914_vm4, %v4925_v35, %v1903_v28  ;;  %v4928_v13 = vrot.slane %v3871_v52, %v3328_v4  ;;  %v4929_v28 = vrot.slane %v3871_v52, %v3334_v8 }
 0x6c8   : > { %v2013_v31 = vsel %vm1914_vm4, %v4926_v9, %v1904_v37  ;;  %v2014_v47 = vsel %vm1914_vm4, %v4927_v49, %v1905_v21  ;;  %v4930_v37 = vrot.slane %v3871_v52, %v3331_v5  ;;  %v4931_v21 = vrot.slane %v3871_v52, %v3339_v20 }
 0x6c9   : > { %v2015_v18 = vsel %vm1914_vm4, %v4928_v13, %v1906_v62  ;;  %v2016_v60 = vsel %vm1914_vm4, %v4929_v28, %v1907_v33  ;;  %v4932_v62 = vrot.slane %v3871_v52, %v3371_v34  ;;  %v4933_v33 = vrot.slane %v3871_v52, %v3400_v29 }
 0x6ca   : > { %v2017_v39 = vsel %vm1914_vm4, %v4930_v37, %v1908_v63  ;;  %v2018_v24 = vsel %vm1914_vm4, %v4931_v21, %v1909_v43  ;;  %v4934_v63 = vrot.slane %v3871_v52, %v3428_v32  ;;  %v2022_v43 = vsel %vm1914_vm4, %v1990_v10, %v1913_v57 }
 0x6cb   : > { %v2019_v41 = vsel %vm1914_vm4, %v4932_v62, %v1910_v0  ;;  %v2020_v45 = vsel %vm1914_vm4, %v4933_v33, %v1911_v27  ;;  %vm2241_vm7 = vcmp.eq.s32.totalorder %v4098_v11, 6  ;;  %v2116_v0 = vsel %vm2023_vm5, %v2039_v6, %v2007_v15 }
 0x6cc   : > { %v2021_v23 = vsel %vm1914_vm4, %v4934_v63, %v1912_v26  ;;  %v2117_v52 = vsel %vm2023_vm5, %v2043_v58, %v2008_v42  ;;  %v2118_v10 = vsel %vm2023_vm5, %v2047_v44, %v2009_v12  ;;  %v2119_v27 = vsel %vm2023_vm5, %v2051_v1, %v2010_v14 }
 0x6cd   : > { %v2120_v6 = vsel %vm2023_vm5, %v2055_v16, %v2011_v54  ;;  %v2121_v58 = vsel %vm2023_vm5, %v2059_v3, %v2012_v46  ;;  %v2122_v44 = vsel %vm2023_vm5, %v2063_v7, %v2013_v31  ;;  %v4935_v1 = vrot.slane %v3951_v61, %v4882_v56 }
 0x6ce   : > { %v4936_v16 = vrot.slane %v3967_v22, %v3328_v4  ;;  %v4937_v3 = vrot.slane %v3967_v22, %v3334_v8  ;;  %v4938_v7 = vrot.slane %v3967_v22, %v3331_v5  ;;  %v4939_v42 = vrot.slane %v3967_v22, %v3339_v20 }
 0x6cf   : > { %v2123_v26 = vsel %vm2023_vm5, %v4935_v1, %v2014_v47  ;;  %v4940_v12 = vrot.slane %v3967_v22, %v3371_v34  ;;  %v4941_v14 = vrot.slane %v3967_v22, %v3400_v29  ;;  %v4942_v54 = vrot.slane %v3967_v22, %v3428_v32 }
 0x6d0   : > { %v2124_v57 = vsel %vm2023_vm5, %v4936_v16, %v2015_v18  ;;  %v2125_v15 = vsel %vm2023_vm5, %v4937_v3, %v2016_v60  ;;  %v2126_v61 = vsel %vm2023_vm5, %v4938_v7, %v2017_v39  ;;  %v2127_v50 = vsel %vm2023_vm5, %v4939_v42, %v2018_v24 }
 0x6d1   : > { %v2128_v40 = vsel %vm2023_vm5, %v4940_v12, %v2019_v41  ;;  %v2129_v53 = vsel %vm2023_vm5, %v4941_v14, %v2020_v45  ;;  %v2130_v35 = vsel %vm2023_vm5, %v4942_v54, %v2021_v23  ;;  %v4943_v46 = vrot.slane %v3967_v22, %v4882_v56 }
 0x6d2   : > { %vm2350_vm8 = vcmp.eq.s32.totalorder %v4098_v11, 7  ;;  %v4944_v31 = vrot.slane %v3969_v19, %v3328_v4  ;;  %v4945_v47 = vrot.slane %v3969_v19, %v3334_v8  ;;  %v4946_v22 = vrot.slane %v3969_v19, %v3331_v5 }
 0x6d3   : > { %v2131_v9 = vsel %vm2023_vm5, %v4943_v46, %v2022_v43  ;;  %v4947_v28 = vrot.slane %v3969_v19, %v3339_v20  ;;  %v4948_v37 = vrot.slane %v3969_v19, %v3371_v34  ;;  %v4949_v21 = vrot.slane %v3969_v19, %v3400_v29 }
 0x6d4   : > { %v2225_v49 = vsel %vm2132_vm6, %v4944_v31, %v2116_v0  ;;  %v2226_v13 = vsel %vm2132_vm6, %v4945_v47, %v2117_v52  ;;  %v2227_v18 = vsel %vm2132_vm6, %v4946_v22, %v2118_v10  ;;  %v4950_v62 = vrot.slane %v3969_v19, %v3428_v32 }
 0x6d5   : > { %v2228_v60 = vsel %vm2132_vm6, %v4947_v28, %v2119_v27  ;;  %v2229_v39 = vsel %vm2132_vm6, %v4948_v37, %v2120_v6  ;;  %v2230_v24 = vsel %vm2132_vm6, %v4949_v21, %v2121_v58  ;;  %v4951_v33 = vrot.slane %v3969_v19, %v4882_v56 }
 0x6d6   : > { %v2231_v41 = vsel %vm2132_vm6, %v4950_v62, %v2122_v44  ;;  %v4952_v63 = vrot.slane %v3971_v55, %v3328_v4  ;;  %v4953_v43 = vrot.slane %v3971_v55, %v3334_v8  ;;  %v4954_v52 = vrot.slane %v3971_v55, %v3331_v5 }
 0x6d7   : > { %v2232_v45 = vsel %vm2132_vm6, %v4951_v33, %v2123_v26  ;;  %v4955_v10 = vrot.slane %v3971_v55, %v3339_v20  ;;  %v4956_v6 = vrot.slane %v3971_v55, %v3371_v34  ;;  %v4957_v44 = vrot.slane %v3971_v55, %v3400_v29 }
 0x6d8   : > { %v2233_v23 = vsel %vm2132_vm6, %v4952_v63, %v2124_v57  ;;  %v2234_v0 = vsel %vm2132_vm6, %v4953_v43, %v2125_v15  ;;  %v2235_v19 = vsel %vm2132_vm6, %v4954_v52, %v2126_v61  ;;  %v4958_v26 = vrot.slane %v3971_v55, %v3428_v32 }
 0x6d9   : > { %v2236_v27 = vsel %vm2132_vm6, %v4955_v10, %v2127_v50  ;;  %v2237_v58 = vsel %vm2132_vm6, %v4956_v6, %v2128_v40  ;;  %v2238_v1 = vsel %vm2132_vm6, %v4957_v44, %v2129_v53  ;;  %v4959_v57 = vrot.slane %v3971_v55, %v4882_v56 }
 0x6da   : > { %v2239_v16 = vsel %vm2132_vm6, %v4958_v26, %v2130_v35  ;;  %v4960_v15 = vrot.slane %v3973_v38, %v3328_v4  ;;  %v4961_v61 = vrot.slane %v3973_v38, %v3334_v8  ;;  %v4962_v50 = vrot.slane %v3973_v38, %v3331_v5 }
 0x6db   : > { %v2240_v3 = vsel %vm2132_vm6, %v4959_v57, %v2131_v9  ;;  %v4963_v12 = vrot.slane %v3973_v38, %v3339_v20  ;;  %v4964_v14 = vrot.slane %v3973_v38, %v3371_v34  ;;  %v4965_v54 = vrot.slane %v3973_v38, %v3400_v29 }
 0x6dc   : > { %v2334_v7 = vsel %vm2241_vm7, %v4960_v15, %v2225_v49  ;;  %v2335_v42 = vsel %vm2241_vm7, %v4961_v61, %v2226_v13  ;;  %v2336_v55 = vsel %vm2241_vm7, %v4962_v50, %v2227_v18  ;;  %v4966_v46 = vrot.slane %v3973_v38, %v3428_v32 }
 0x6dd   : > { %v2337_v40 = vsel %vm2241_vm7, %v4963_v12, %v2228_v60  ;;  %v2338_v53 = vsel %vm2241_vm7, %v4964_v14, %v2229_v39  ;;  %v2339_v35 = vsel %vm2241_vm7, %v4965_v54, %v2230_v24  ;;  %v4967_v31 = vrot.slane %v3973_v38, %v4882_v56 }
 0x6de   : > { %v2340_v9 = vsel %vm2241_vm7, %v4966_v46, %v2231_v41  ;;  %v4968_v47 = vrot.slane %v3975_v2, %v3328_v4  ;;  %v4969_v22 = vrot.slane %v3975_v2, %v3334_v8  ;;  %v4970_v28 = vrot.slane %v3975_v2, %v3331_v5 }
 0x6df   : > { %v2341_v49 = vsel %vm2241_vm7, %v4967_v31, %v2232_v45  ;;  %v4971_v60 = vrot.slane %v3975_v2, %v3339_v20  ;;  %v4972_v39 = vrot.slane %v3975_v2, %v3371_v34  ;;  %v4973_v24 = vrot.slane %v3975_v2, %v3400_v29 }
 0x6e0   : > { %v2342_v13 = vsel %vm2241_vm7, %v4968_v47, %v2233_v23  ;;  %v2343_v18 = vsel %vm2241_vm7, %v4969_v22, %v2234_v0  ;;  %v2344_v38 = vsel %vm2241_vm7, %v4970_v28, %v2235_v19  ;;  %v4974_v41 = vrot.slane %v3975_v2, %v3428_v32 }
 0x6e1   : > { %v2345_v37 = vsel %vm2241_vm7, %v4971_v60, %v2236_v27  ;;  %v2346_v21 = vsel %vm2241_vm7, %v4972_v39, %v2237_v58  ;;  %v2347_v62 = vsel %vm2241_vm7, %v4973_v24, %v2238_v1  ;;  %v4975_v45 = vrot.slane %v3975_v2, %v4882_v56 }
 0x6e2   : > { %v2348_v33 = vsel %vm2241_vm7, %v4974_v41, %v2239_v16  ;;  %v4976_v23 = vrot.slane %v3981_v25, %v3328_v4  ;;  %v4977_v2 = vrot.slane %v3981_v25, %v3334_v8  ;;  %v4978_v52 = vrot.slane %v3981_v25, %v3331_v5 }
 0x6e3   : > { %v2349_v63 = vsel %vm2241_vm7, %v4975_v45, %v2240_v3  ;;  %v2446_v10 = vsel %vm2350_vm8, %v2378_v51, %v2337_v40  ;;  %v4979_v27 = vrot.slane %v3981_v25, %v3371_v34  ;;  %v4980_v58 = vrot.slane %v3981_v25, %v3400_v29 }
 0x6e4   : > { %v2443_v43 = vsel %vm2350_vm8, %v4976_v23, %v2334_v7  ;;  %v2444_v0 = vsel %vm2350_vm8, %v4977_v2, %v2335_v42  ;;  %v2445_v19 = vsel %vm2350_vm8, %v4978_v52, %v2336_v55  ;;  %v4981_v1 = vrot.slane %v3981_v25, %v3428_v32  ;;  %2462 = vst [vmem:[%s4682_s5 + $0x18] sm:$0xff] %v2446_v10 }
 0x6e5   : > { %v2447_v6 = vsel %vm2350_vm8, %v4979_v27, %v2338_v53  ;;  %v2448_v44 = vsel %vm2350_vm8, %v4980_v58, %v2339_v35  ;;  %v4982_v51 = vrot.slane %v3981_v25, %v4882_v56  ;;  %2459 = vst [vmem:[%s4682_s5] sm:$0xff] %v2443_v43  ;;  %2460 = vst [vmem:[%s4682_s5 + $0x8] sm:$0xff] %v2444_v0 }
 0x6e6   : > { %v2449_v26 = vsel %vm2350_vm8, %v4981_v1, %v2340_v9  ;;  %2461 = vst [vmem:[%s4682_s5 + $0x10] sm:$0xff] %v2445_v19  ;;  %v4983_v57 = vrot.slane %v3983_v48, %v3328_v4  ;;  %v4984_v15 = vrot.slane %v3983_v48, %v3334_v8  ;;  %v2453_v7 = vsel %vm2350_vm8, %v2406_v36, %v2344_v38 }
 0x6e7   : > { %v2450_v16 = vsel %vm2350_vm8, %v4982_v51, %v2341_v49  ;;  %v2454_v4 = vsel %vm2350_vm8, %v2410_v17, %v2345_v37  ;;  %2463 = vst [vmem:[%s4682_s5 + $0x20] sm:$0xff] %v2447_v6  ;;  %2464 = vst [vmem:[%s4682_s5 + $0x28] sm:$0xff] %v2448_v44  ;;  %v2455_v5 = vsel %vm2350_vm8, %v2414_v30, %v2346_v21 }
 0x6e8   : > { %v2451_v3 = vsel %vm2350_vm8, %v4983_v57, %v2342_v13  ;;  %v2452_v25 = vsel %vm2350_vm8, %v4984_v15, %v2343_v18  ;;  %2465 = vst [vmem:[%s4682_s5 + $0x30] sm:$0xff] %v2449_v26  ;;  %2466 = vst [vmem:[%s4682_s5 + $0x38] sm:$0xff] %v2450_v16  ;;  %v2456_v8 = vsel %vm2350_vm8, %v2418_v59, %v2347_v62 }
 0x6e9   : > { %v4985_v20 = vrot.slane %v3983_v48, %v3428_v32  ;;  %v4986_v34 = vrot.slane %v3983_v48, %v4882_v56  ;;  %2467 = vst [vmem:[%s4682_s5 + $0x40] sm:$0xff] %v2451_v3  ;;  %2468 = vst [vmem:[%s4682_s5 + $0x48] sm:$0xff] %v2452_v25 }
 0x6ea   : > { %2469 = vst [vmem:[%s4682_s5 + $0x50] sm:$0xff] %v2453_v7  ;;  %2470 = vst [vmem:[%s4682_s5 + $0x58] sm:$0xff] %v2454_v4 }
 0x6eb   : > { %v2457_v36 = vsel %vm2350_vm8, %v4985_v20, %v2348_v33  ;;  %v2458_v17 = vsel %vm2350_vm8, %v4986_v34, %v2349_v63  ;;  %2471 = vst [vmem:[%s4682_s5 + $0x60] sm:$0xff] %v2455_v5  ;;  %2472 = vst [vmem:[%s4682_s5 + $0x68] sm:$0xff] %v2456_v8 }
 0x6ec   : > { %2473 = vst [vmem:[%s4682_s5 + $0x70] sm:$0xff] %v2457_v36  ;;  %2474 = vst [vmem:[%s4682_s5 + $0x78] sm:$0xff] %v2458_v17 }
 0x6ed   : > { %2788 = shalt.err (!%p2785_p1)
}
 0x6ee   : > { %s2789_s10 = scalar_lea.hbm %s4756_s14, 2048  ;;  %s2793_s7 = scalar_lea.hbm %s4832_s4, 4096 }
 0x6ef   : > { %p2790_p11 = scmp.ne.s32.totalorder %s4756_s14, %s2789_s10  ;;  %p2794_p9 = scmp.lt.u32.totalorder %s4756_s14, %s4832_s4 }
 0x6f0   : > { %p2795_p5 = scmp.lt.u32.totalorder %s2793_s7, %s2789_s10  ;;  %p2797_p2 = scmp.lt.u32.totalorder %s2789_s10, %s4756_s14 }
 0x6f1   : > { %p2791_p12 = pnand %p2790_p11, %p4987_p0 }
 0x6f2   : > { %p2796_p10 = por %p2795_p5, %p2794_p9 }
 0x6f3   : > { %p2792_p3 = pneg %p2791_p12 }
 0x6f4   : > { %p2798_p8 = por %p2797_p2, %p2796_p10 }
 0x6f6   : > { %p2799_p4 = pnand %p2798_p8, %p2792_p3 }
 0x6f8   : > { %2802 = shalt.err (!%p2799_p4)
}
 0x6f9   : > { %2623 = dma.vmem_to_hbm [thread:$0]  (%p4987_p0), %s4758_s20, 2048, %s4756_s14, %s2476_s22  }
 0x6fa PF: > { %s2502_s25 = sand.u32 1, %s2837_s15   ;;  %p4988_p7 = scmp.ne.s32.totalorder %s4856_s28, 0 }
 0x6fb   : > { %p4989_p6 = scmp.ge.s32.totalorder %s2849_s18, 2  ;;  %s2503_s30 = scalar_lea.sflag [#allocation4], %s2502_s25 }
 0x6fd   : > { %p2637_p13 = pnand %p4989_p6, %p4988_p7 }
 0x6ff   : > { %2832 = dma.done.wait (!%p2637_p13), %s2503_s30, 2048  }
 0x700   : > { %2834 = vsyncadd (!%p2637_p13), %s2503_s30, 4294965248  ;;  %p18_p1 = scmp.ge.s32.totalorder %s2910_s21, 4   ;;  %s4990_s15 = smov %s2841_s16 }
 0x701   : > { %s4991_s16 = smov %s2845_s17  ;;  %s4992_s17 = smov %s2922_s24 }
 0x702   : > { %s4993_s18 = smov %s2910_s21  ;;  %20 = sbr.rel (!%p18_p1) target bundleno = 6 (0x6), region = 105 }
 0x709   :  { %2508 = vsyncpa [#allocation3], 1 }
 0x70a   :  { %2510 = vsyncpa [#allocation3 + $0x1], 1 }
 0x70b   :  { %2511 = vsyncpa [#allocation6], 1 }
 0x70c   :  { %2513 = vsyncpa [#allocation6 + $0x1], 1 }
 0x70d   :  { %2514 = vsyncpa [#allocation4], 1 }
 0x70e   :  { %2516 = vsyncpa [#allocation4 + $0x1], 1 }

</bundles_post_ra>
